<compile_context>
chip_gen: v7x
topology: tpu7x:2x2x1
jax: 0.10.0
libtpu: 0.0.40
codegen_flags: <defaults>
</compile_context>

<pallas_src>
import functools

import jax
import jax.numpy as jnp
from jax import lax
from jax.experimental import pallas as pl
from jax.experimental.pallas import tpu as pltpu


# ----------------------------- fused 2-layer GAT kernel -----------------------------
def _gat2_kernel(x_ref, adj_ref, w1_ref, a1_ref, b1_ref, w2_ref, a2_ref, b2_ref,
                 o_ref, *, heads, f1, f2):
    adj = adj_ref[...]                                   # (N, N); adj[i, j]=1 if edge j->i (incl. self-loop)

    def layer(x, w_ref_, a_ref_, b_ref_, f_out, apply_elu):
        n = x.shape[0]
        # one fused MXU matmul for all heads: (N, F_in) @ (F_in, heads*f_out)
        hh_all = jnp.dot(x, w_ref_[...], preferred_element_type=jnp.float32)
        # all 2*heads attention projections in one matmul: (N, 2*heads)
        scores = jnp.dot(hh_all, a_ref_[...], preferred_element_type=jnp.float32)
        scores_t = scores.T                              # (2*heads, N), single small XLU transpose
        acc = jnp.zeros((n, f_out), jnp.float32)
        for h in range(heads):
            hh = hh_all[:, h * f_out:(h + 1) * f_out]    # (N, f_out), lane-aligned slice
            # e[i, j] = a_dst . Wx_i + a_src . Wx_j
            e = scores[:, heads + h:heads + h + 1] + scores_t[h:h + 1, :]
            e = jnp.where(e > 0, e, 0.2 * e)             # LeakyReLU(0.2)
            e = jnp.where(adj > 0, e, -1e30)             # mask non-edges
            m = jnp.max(e, axis=1, keepdims=True)
            p = jnp.exp(e - m)
            alpha = p / jnp.sum(p, axis=1, keepdims=True)
            acc = acc + jnp.dot(alpha, hh, preferred_element_type=jnp.float32)
        out = acc * (1.0 / heads) + b_ref_[...]          # concat=False -> mean over heads
        if apply_elu:
            out = jnp.where(out > 0, out, jnp.exp(out) - 1.0)
        return out

    h1 = layer(x_ref[...], w1_ref, a1_ref, b1_ref, f1, True)   # F.elu(conv1(x))
    o_ref[...] = layer(h1, w2_ref, a2_ref, b2_ref, f2, False)  # conv2(x)


def gat_forward(x, adj, gat1, gat2, *, heads, f1, f2):
    n = x.shape[0]
    kernel = functools.partial(_gat2_kernel, heads=heads, f1=f1, f2=f2)
    return pl.pallas_call(
        kernel,
        out_shape=jax.ShapeDtypeStruct((n, f2), jnp.float32),
        in_specs=[pl.BlockSpec(memory_space=pltpu.MemorySpace.VMEM)] * 8,
        out_specs=pl.BlockSpec(memory_space=pltpu.MemorySpace.VMEM),
    )(x, adj, *gat1, *gat2)


# ----------------------------- fused LSTM stack + FC heads kernel -----------------------------
def _lstm_fc_kernel(*refs, hidden, num_layers, unroll):
    x_ref = refs[0]                                      # (T, B, I) time-major
    lstm_refs = refs[1:1 + 3 * num_layers]               # per layer: (I,4H), (H,4H), (1,4H)
    fw1_ref, fb1_ref, fw2_ref, fb2_ref = refs[1 + 3 * num_layers:5 + 3 * num_layers]
    o_ref = refs[5 + 3 * num_layers]                     # (B, K*out)
    hseq_scr, xp_scr = refs[6 + 3 * num_layers:]         # VMEM scratch

    t_total, bsz, _ = x_ref.shape
    h4 = 4 * hidden
    h_last = None

    for layer in range(num_layers):
        wih = lstm_refs[3 * layer][...]                  # (I_l, 4H) pre-transposed
        whh = lstm_refs[3 * layer + 1][...]              # (H, 4H)  pre-transposed
        b = lstm_refs[3 * layer + 2][...]                # (1, 4H)  b_ih + b_hh
        xin = x_ref[...] if layer == 0 else hseq_scr[...]
        in_sz = xin.shape[-1]

        # hoisted input projection + bias: one big MXU matmul, outside the recurrence
        xp = jnp.dot(xin.reshape(t_total * bsz, in_sz), wih,
                     preferred_element_type=jnp.float32) + b
        xp_scr[...] = xp.reshape(t_total, bsz, h4)

        last = layer == num_layers - 1

        def step(tt, carry, _whh=whh, _last=last):
            h, c = carry
            gates = xp_scr[tt] + jnp.dot(h, _whh, preferred_element_type=jnp.float32)
            i_g = jax.nn.sigmoid(gates[:, 0 * hidden:1 * hidden])
            f_g = jax.nn.sigmoid(gates[:, 1 * hidden:2 * hidden])
            g_g = jnp.tanh(gates[:, 2 * hidden:3 * hidden])
            o_g = jax.nn.sigmoid(gates[:, 3 * hidden:4 * hidden])
            c_new = f_g * c + i_g * g_g
            h_new = o_g * jnp.tanh(c_new)
            if not _last:
                hseq_scr[tt] = h_new                     # only needed as next layer's input
            return (h_new, c_new)

        h0 = jnp.zeros((bsz, hidden), jnp.float32)
        c0 = jnp.zeros((bsz, hidden), jnp.float32)
        h_last, _ = lax.fori_loop(0, t_total, step, (h0, c0), unroll=unroll)

    # fused FC heads: relu(h @ W1f + b1f) @ W2_blockdiag + b2f, lane-packed output
    hmid = jnp.maximum(
        jnp.dot(h_last, fw1_ref[...], preferred_element_type=jnp.float32) + fb1_ref[...],
        0.0)
    o_ref[...] = jnp.dot(hmid, fw2_ref[...], preferred_element_type=jnp.float32) + fb2_ref[...]


def lstm_fc_forward(seq, lstm_params, fc_params, *, hidden, unroll=8):
    t, b, _ = seq.shape
    num_layers = len(lstm_params) // 3
    k_out = fc_params[3].shape[1]                        # K * output_size
    n_in = 1 + 3 * num_layers + 4
    kernel = functools.partial(_lstm_fc_kernel, hidden=hidden,
                               num_layers=num_layers, unroll=unroll)
    return pl.pallas_call(
        kernel,
        out_shape=jax.ShapeDtypeStruct((b, k_out), jnp.float32),
        in_specs=[pl.BlockSpec(memory_space=pltpu.MemorySpace.VMEM)] * n_in,
        out_specs=pl.BlockSpec(memory_space=pltpu.MemorySpace.VMEM),
        scratch_shapes=[pltpu.VMEM((t, b, hidden), jnp.float32),       # hidden seq (intermediate layers)
                        pltpu.VMEM((t, b, 4 * hidden), jnp.float32)],  # hoisted input projection
    )(seq, *lstm_params, *fc_params)


# ----------------------------- host-side parameter prep (fuse / pad / transpose) -----------------------------
def _prep_gat(w, a_src, a_dst, b, in_pad, out_pad):
    heads, f_in, f_out = w.shape
    w = jnp.pad(w, ((0, 0), (0, in_pad - f_in), (0, out_pad - f_out)))
    a_src = jnp.pad(a_src, ((0, 0), (0, out_pad - f_out)))
    a_dst = jnp.pad(a_dst, ((0, 0), (0, out_pad - f_out)))
    b = jnp.pad(b, ((0, 0), (0, out_pad - f_out)))
    w_fused = jnp.transpose(w, (1, 0, 2)).reshape(in_pad, heads * out_pad)
    a_mat = jnp.zeros((heads * out_pad, 2 * heads), jnp.float32)
    for h in range(heads):
        a_mat = a_mat.at[h * out_pad:(h + 1) * out_pad, h].set(a_src[h])
        a_mat = a_mat.at[h * out_pad:(h + 1) * out_pad, heads + h].set(a_dst[h])
    return (w_fused, a_mat, b)


def prepare_params(params, *, out_feats=128, hidden=128):
    prepped = {}
    w1, as1, ad1, b1 = params["gat1"]
    prepped["gat1"] = _prep_gat(w1, as1, ad1, b1, in_pad=w1.shape[1], out_pad=128)
    w2, as2, ad2, b2 = params["gat2"]
    prepped["gat2"] = _prep_gat(w2, as2, ad2, b2, in_pad=128, out_pad=out_feats)

    lstm_flat = []
    for (w_ih, w_hh, b_ih, b_hh) in params["lstm"]:
        lstm_flat += [jnp.transpose(w_ih),                       # (I, 4H) lane-major
                      jnp.transpose(w_hh),                       # (H, 4H)
                      (b_ih + b_hh).reshape(1, 4 * hidden).astype(jnp.float32)]
    prepped["lstm"] = lstm_flat

    w1f, b1f, w2f, b2f = params["fc"]                            # (K,128,64),(K,1,64),(K,64,out),(K,1,out)
    k, h_in, mid = w1f.shape
    out_size = w2f.shape[2]
    fc_w1 = jnp.transpose(w1f, (1, 0, 2)).reshape(h_in, k * mid)
    fc_b1 = b1f.reshape(1, k * mid)
    fc_w2 = jnp.zeros((k * mid, k * out_size), jnp.float32)
    for i in range(k):
        fc_w2 = fc_w2.at[i * mid:(i + 1) * mid, i * out_size:(i + 1) * out_size].set(w2f[i])
    fc_b2 = b2f.reshape(1, k * out_size)
    prepped["fc"] = [fc_w1, fc_b1, fc_w2, fc_b2]
    return prepped


# ----------------------------- full forward -----------------------------
def gnn_lstm_forward(prepped, x_nodes, adj, y_nodes, batch_size, input_size, output_size,
                     *, heads=4, out_feats=128, hidden=128):
    gat_out = gat_forward(x_nodes, adj, prepped["gat1"], prepped["gat2"],
                          heads=heads, f1=128, f2=out_feats)     # (N, 128)

    # regroup nodes by graph + permute(0,2,1) + time-major:
    # seq[t, b, n] = gat_out[b*input_size + n, t]
    seq = gat_out.T.reshape(out_feats, batch_size, input_size)   # (T=128, B, input_size)
    y = y_nodes.reshape(batch_size, input_size, output_size)

    pred_flat = lstm_fc_forward(seq, prepped["lstm"], prepped["fc"], hidden=hidden)  # (B, K*out)
    pred = pred_flat.reshape(batch_size, input_size, output_size).transpose(1, 0, 2)
    return pred, y                                               # pred: (input_size, B, output_size)


# ----------------------------- pure-JAX reference (original, un-fused params) -----------------------------
def reference_forward(params, x_nodes, adj, y_nodes, batch_size, input_size, output_size,
                      *, heads=4, hidden=128):
    def gat_layer(x, w, a_src, a_dst, b, apply_elu):
        outs = []
        for h in range(heads):
            hh = x @ w[h]
            e = (hh @ a_dst[h])[:, None] + (hh @ a_src[h])[None, :]
            e = jnp.where(e > 0, e, 0.2 * e)
            e = jnp.where(adj > 0, e, -1e30)
            e = e - jnp.max(e, axis=1, keepdims=True)
            p = jnp.exp(e)
            alpha = p / jnp.sum(p, axis=1, keepdims=True)
            outs.append(alpha @ hh)
        out = sum(outs) / heads + b
        if apply_elu:
            out = jnp.where(out > 0, out, jnp.exp(out) - 1.0)
        return out

    g1 = gat_layer(x_nodes, *params["gat1"], True)
    g2 = gat_layer(g1, *params["gat2"], False)                    # (N, 128)
    seq = g2.reshape(batch_size, input_size, -1).transpose(0, 2, 1)  # (B, T=128, input_size)

    h = seq
    for (w_ih, w_hh, b_ih, b_hh) in params["lstm"]:
        bsz = h.shape[0]

        def step(carry, x_t):
            ht, ct = carry
            gates = x_t @ w_ih.T + ht @ w_hh.T + b_ih + b_hh
            i = jax.nn.sigmoid(gates[:, :hidden])
            f = jax.nn.sigmoid(gates[:, hidden:2 * hidden])
            g = jnp.tanh(gates[:, 2 * hidden:3 * hidden])
            o = jax.nn.sigmoid(gates[:, 3 * hidden:])
            ct = f * ct + i * g
            ht = o * jnp.tanh(ct)
            return (ht, ct), ht

        (_, _), hs = lax.scan(step,
                              (jnp.zeros((bsz, hidden), jnp.float32),
                               jnp.zeros((bsz, hidden), jnp.float32)),
                              jnp.transpose(h, (1, 0, 2)))
        h = jnp.transpose(hs, (1, 0, 2))
    h_last = h[:, -1, :]                                          # (B, 128)

    w1f, b1f, w2f, b2f = params["fc"]
    preds = []
    for k in range(input_size):
        mid = jnp.maximum(h_last @ w1f[k] + b1f[k], 0.0)
        preds.append(mid @ w2f[k] + b2f[k])
    pred = jnp.stack(preds, axis=0)                               # (K, B, out)
    y = y_nodes.reshape(batch_size, input_size, output_size)
    return pred, y


# ----------------------------- deterministic params -----------------------------
def init_params(key, seq_len, input_size, output_size, num_layers,
                h_feats=100, out_feats=128, hidden=128, heads=4):
    keys = iter(jax.random.split(key, 32))

    def rnd(shape, scale=0.1):
        return (scale * jax.random.normal(next(keys), shape)).astype(jnp.float32)

    params = {}
    # GATConv(seq_len -> 100, heads=4, concat=False)
    params["gat1"] = (rnd((heads, seq_len, h_feats)),
                      rnd((heads, h_feats)), rnd((heads, h_feats)),
                      rnd((1, h_feats)))
    # GATConv(100 -> 128, heads=4, concat=False)
    params["gat2"] = (rnd((heads, h_feats, out_feats)),
                      rnd((heads, out_feats)), rnd((heads, out_feats)),
                      rnd((1, out_feats)))
    # LSTM(input_size -> 128, num_layers), PyTorch gate order i,f,g,o
    lstm = []
    in_sz = input_size
    for _ in range(num_layers):
        lstm.append((rnd((4 * hidden, in_sz)), rnd((4 * hidden, hidden)),
                     rnd((4 * hidden,)), rnd((4 * hidden,))))
        in_sz = hidden
    params["lstm"] = lstm
    # input_size heads of Linear(128,64)->ReLU->Linear(64,output_size), stored (in,out)
    params["fc"] = (rnd((input_size, hidden, 64)), rnd((input_size, 1, 64)),
                    rnd((input_size, 64, output_size)), rnd((input_size, 1, output_size)))
    return params


if __name__ == "__main__":
    seq_len = 8          # args.seq_len  (GAT in_feats == node-feature width)
    input_size = 4       # args.input_size == nodes per graph == LSTM feature dim
    output_size = 2      # args.output_size
    num_layers = 2       # args.num_layers
    batch_size = 2
    num_nodes = batch_size * input_size

    key = jax.random.PRNGKey(0)
    k_param, k_x, k_y = jax.random.split(key, 3)
    params = init_params(k_param, seq_len, input_size, output_size, num_layers)
    prepped = prepare_params(params)

    x_nodes = jax.random.normal(k_x, (num_nodes, seq_len), dtype=jnp.float32)      # data.x
    y_nodes = jax.random.normal(k_y, (num_nodes, output_size), dtype=jnp.float32)  # data.y
    # data.batch = [0,0,0,0,1,1,1,1] (contiguous, sorted)

    # edge_index: bidirectional ring inside each graph; densified + self loops
    src, dst = [], []
    for g in range(batch_size):
        off = g * input_size
        for i in range(input_size):
            j = (i + 1) % input_size
            src += [off + i, off + j]
            dst += [off + j, off + i]
    adj = jnp.zeros((num_nodes, num_nodes), jnp.float32)
    adj = adj.at[jnp.array(dst), jnp.array(src)].set(1.0)
    adj = adj.at[jnp.arange(num_nodes), jnp.arange(num_nodes)].set(1.0)  # add_self_loops

    pred, y = gnn_lstm_forward(prepped, x_nodes, adj, y_nodes,
                               batch_size, input_size, output_size)
    pred, y = jax.block_until_ready((pred, y))

    pred_ref, y_ref = jax.jit(
        functools.partial(reference_forward,
                          batch_size=batch_size, input_size=input_size,
                          output_size=output_size))(params, x_nodes, adj, y_nodes)
    pred_ref, y_ref = jax.block_until_ready((pred_ref, y_ref))

    assert pred.shape == (input_size, batch_size, output_size)
    assert y.shape == (batch_size, input_size, output_size)
    assert bool(jnp.all(jnp.isfinite(pred)))
    assert bool(jnp.allclose(y, y_ref))
    assert bool(jnp.allclose(pred, pred_ref, rtol=2e-3, atol=1e-3)), \
        f"max|diff|={float(jnp.max(jnp.abs(pred - pred_ref)))}"
    print("KERNEL_OK")
</pallas_src>

<mosaic_0001>
module attributes {stable_mosaic.version = 11 : i64} {
  func.func @_gat2_kernel(%arg0: memref<8x8xf32, #tpu.memory_space<vmem>>, %arg1: memref<8x8xf32, #tpu.memory_space<vmem>>, %arg2: memref<8x512xf32, #tpu.memory_space<vmem>>, %arg3: memref<512x8xf32, #tpu.memory_space<vmem>>, %arg4: memref<1x128xf32, #tpu.memory_space<vmem>>, %arg5: memref<128x512xf32, #tpu.memory_space<vmem>>, %arg6: memref<512x8xf32, #tpu.memory_space<vmem>>, %arg7: memref<1x128xf32, #tpu.memory_space<vmem>>, %arg8: memref<8x128xf32, #tpu.memory_space<vmem>>) attributes {dimension_semantics = [], scalar_prefetch = 0 : i64, scratch_operands = 0 : i64, tpu.core_type = #tpu.core_type<tc>} {
    %c0 = arith.constant 0 : index
    %c0_0 = arith.constant 0 : index
    %0 = vector.load %arg1[%c0, %c0_0] : memref<8x8xf32, #tpu.memory_space<vmem>>, vector<8x8xf32>
    %c0_1 = arith.constant 0 : index
    %c0_2 = arith.constant 0 : index
    %1 = vector.load %arg0[%c0_1, %c0_2] : memref<8x8xf32, #tpu.memory_space<vmem>>, vector<8x8xf32>
    %c0_3 = arith.constant 0 : index
    %c0_4 = arith.constant 0 : index
    %2 = vector.load %arg2[%c0_3, %c0_4] : memref<8x512xf32, #tpu.memory_space<vmem>>, vector<8x512xf32>
    %cst = arith.constant dense<0.000000e+00> : vector<8x512xf32>
    %3 = tpu.matmul %1, %2, %cst {dimension_numbers = #tpu.dot_dimension_numbers<[1], [0], [0], [1], [0, 0, 1, 1], [], []>} : vector<8x8xf32>, vector<8x512xf32>, vector<8x512xf32> -> vector<8x512xf32>
    %c0_5 = arith.constant 0 : index
    %c0_6 = arith.constant 0 : index
    %4 = vector.load %arg3[%c0_5, %c0_6] : memref<512x8xf32, #tpu.memory_space<vmem>>, vector<512x8xf32>
    %cst_7 = arith.constant dense<0.000000e+00> : vector<8x8xf32>
    %5 = tpu.matmul %3, %4, %cst_7 {dimension_numbers = #tpu.dot_dimension_numbers<[1], [0], [0], [1], [0, 0, 1, 1], [], []>} : vector<8x512xf32>, vector<512x8xf32>, vector<8x8xf32> -> vector<8x8xf32>
    %6 = tpu.transpose %5, [1, 0] : vector<8x8xf32> -> vector<8x8xf32>
    %cst_8 = arith.constant 0.000000e+00 : f32
    %7 = vector.broadcast %cst_8 : f32 to vector<8x128xf32>
    %8 = vector.extract_strided_slice %3 {offsets = [0, 0], sizes = [8, 128], strides = [1, 1]} : vector<8x512xf32> to vector<8x128xf32>
    %9 = vector.extract_strided_slice %5 {offsets = [0, 4], sizes = [8, 1], strides = [1, 1]} : vector<8x8xf32> to vector<8x1xf32>
    %10 = vector.extract_strided_slice %6 {offsets = [0, 0], sizes = [1, 8], strides = [1, 1]} : vector<8x8xf32> to vector<1x8xf32>
    %11 = vector.broadcast %9 : vector<8x1xf32> to vector<8x8xf32>
    %12 = vector.broadcast %10 : vector<1x8xf32> to vector<8x8xf32>
    %13 = arith.addf %11, %12 : vector<8x8xf32>
    %cst_9 = arith.constant 0.000000e+00 : f32
    %14 = vector.broadcast %cst_9 : f32 to vector<8x8xf32>
    %15 = arith.cmpf ogt, %13, %14 : vector<8x8xf32>
    %cst_10 = arith.constant 2.000000e-01 : f32
    %16 = vector.broadcast %cst_10 : f32 to vector<8x8xf32>
    %17 = arith.mulf %16, %13 : vector<8x8xf32>
    %18 = arith.select %15, %13, %17 : vector<8x8xi1>, vector<8x8xf32>
    %cst_11 = arith.constant 0.000000e+00 : f32
    %19 = vector.broadcast %cst_11 : f32 to vector<8x8xf32>
    %20 = arith.cmpf ogt, %0, %19 : vector<8x8xf32>
    %cst_12 = arith.constant -1.000000e+30 : f32
    %21 = vector.broadcast %cst_12 : f32 to vector<8x8xf32>
    %22 = arith.select %20, %18, %21 : vector<8x8xi1>, vector<8x8xf32>
    %cst_13 = arith.constant dense<0xFF800000> : vector<8xf32>
    %23 = vector.multi_reduction <maximumf>, %22, %cst_13 [1] : vector<8x8xf32> to vector<8xf32>
    %24 = vector.shape_cast %23 : vector<8xf32> to vector<8x1xf32>
    %25 = vector.broadcast %24 : vector<8x1xf32> to vector<8x8xf32>
    %26 = arith.subf %22, %25 : vector<8x8xf32>
    %27 = math.exp %26 : vector<8x8xf32>
    %cst_14 = arith.constant dense<0.000000e+00> : vector<8xf32>
    %28 = vector.multi_reduction <add>, %27, %cst_14 [1] : vector<8x8xf32> to vector<8xf32>
    %29 = vector.shape_cast %28 : vector<8xf32> to vector<8x1xf32>
    %30 = vector.broadcast %29 : vector<8x1xf32> to vector<8x8xf32>
    %31 = arith.divf %27, %30 : vector<8x8xf32>
    %cst_15 = arith.constant dense<0.000000e+00> : vector<8x128xf32>
    %32 = tpu.matmul %31, %8, %cst_15 {dimension_numbers = #tpu.dot_dimension_numbers<[1], [0], [0], [1], [0, 0, 1, 1], [], []>} : vector<8x8xf32>, vector<8x128xf32>, vector<8x128xf32> -> vector<8x128xf32>
    %33 = arith.addf %7, %32 : vector<8x128xf32>
    %34 = vector.extract_strided_slice %3 {offsets = [0, 128], sizes = [8, 128], strides = [1, 1]} : vector<8x512xf32> to vector<8x128xf32>
    %35 = vector.extract_strided_slice %5 {offsets = [0, 5], sizes = [8, 1], strides = [1, 1]} : vector<8x8xf32> to vector<8x1xf32>
    %36 = vector.extract_strided_slice %6 {offsets = [1, 0], sizes = [1, 8], strides = [1, 1]} : vector<8x8xf32> to vector<1x8xf32>
    %37 = vector.broadcast %35 : vector<8x1xf32> to vector<8x8xf32>
    %38 = vector.broadcast %36 : vector<1x8xf32> to vector<8x8xf32>
    %39 = arith.addf %37, %38 : vector<8x8xf32>
    %cst_16 = arith.constant 0.000000e+00 : f32
    %40 = vector.broadcast %cst_16 : f32 to vector<8x8xf32>
    %41 = arith.cmpf ogt, %39, %40 : vector<8x8xf32>
    %cst_17 = arith.constant 2.000000e-01 : f32
    %42 = vector.broadcast %cst_17 : f32 to vector<8x8xf32>
    %43 = arith.mulf %42, %39 : vector<8x8xf32>
    %44 = arith.select %41, %39, %43 : vector<8x8xi1>, vector<8x8xf32>
    %cst_18 = arith.constant 0.000000e+00 : f32
    %45 = vector.broadcast %cst_18 : f32 to vector<8x8xf32>
    %46 = arith.cmpf ogt, %0, %45 : vector<8x8xf32>
    %cst_19 = arith.constant -1.000000e+30 : f32
    %47 = vector.broadcast %cst_19 : f32 to vector<8x8xf32>
    %48 = arith.select %46, %44, %47 : vector<8x8xi1>, vector<8x8xf32>
    %cst_20 = arith.constant dense<0xFF800000> : vector<8xf32>
    %49 = vector.multi_reduction <maximumf>, %48, %cst_20 [1] : vector<8x8xf32> to vector<8xf32>
    %50 = vector.shape_cast %49 : vector<8xf32> to vector<8x1xf32>
    %51 = vector.broadcast %50 : vector<8x1xf32> to vector<8x8xf32>
    %52 = arith.subf %48, %51 : vector<8x8xf32>
    %53 = math.exp %52 : vector<8x8xf32>
    %cst_21 = arith.constant dense<0.000000e+00> : vector<8xf32>
    %54 = vector.multi_reduction <add>, %53, %cst_21 [1] : vector<8x8xf32> to vector<8xf32>
    %55 = vector.shape_cast %54 : vector<8xf32> to vector<8x1xf32>
    %56 = vector.broadcast %55 : vector<8x1xf32> to vector<8x8xf32>
    %57 = arith.divf %53, %56 : vector<8x8xf32>
    %cst_22 = arith.constant dense<0.000000e+00> : vector<8x128xf32>
    %58 = tpu.matmul %57, %34, %cst_22 {dimension_numbers = #tpu.dot_dimension_numbers<[1], [0], [0], [1], [0, 0, 1, 1], [], []>} : vector<8x8xf32>, vector<8x128xf32>, vector<8x128xf32> -> vector<8x128xf32>
    %59 = arith.addf %33, %58 : vector<8x128xf32>
    %60 = vector.extract_strided_slice %3 {offsets = [0, 256], sizes = [8, 128], strides = [1, 1]} : vector<8x512xf32> to vector<8x128xf32>
    %61 = vector.extract_strided_slice %5 {offsets = [0, 6], sizes = [8, 1], strides = [1, 1]} : vector<8x8xf32> to vector<8x1xf32>
    %62 = vector.extract_strided_slice %6 {offsets = [2, 0], sizes = [1, 8], strides = [1, 1]} : vector<8x8xf32> to vector<1x8xf32>
    %63 = vector.broadcast %61 : vector<8x1xf32> to vector<8x8xf32>
    %64 = vector.broadcast %62 : vector<1x8xf32> to vector<8x8xf32>
    %65 = arith.addf %63, %64 : vector<8x8xf32>
    %cst_23 = arith.constant 0.000000e+00 : f32
    %66 = vector.broadcast %cst_23 : f32 to vector<8x8xf32>
    %67 = arith.cmpf ogt, %65, %66 : vector<8x8xf32>
    %cst_24 = arith.constant 2.000000e-01 : f32
    %68 = vector.broadcast %cst_24 : f32 to vector<8x8xf32>
    %69 = arith.mulf %68, %65 : vector<8x8xf32>
    %70 = arith.select %67, %65, %69 : vector<8x8xi1>, vector<8x8xf32>
    %cst_25 = arith.constant 0.000000e+00 : f32
    %71 = vector.broadcast %cst_25 : f32 to vector<8x8xf32>
    %72 = arith.cmpf ogt, %0, %71 : vector<8x8xf32>
    %cst_26 = arith.constant -1.000000e+30 : f32
    %73 = vector.broadcast %cst_26 : f32 to vector<8x8xf32>
    %74 = arith.select %72, %70, %73 : vector<8x8xi1>, vector<8x8xf32>
    %cst_27 = arith.constant dense<0xFF800000> : vector<8xf32>
    %75 = vector.multi_reduction <maximumf>, %74, %cst_27 [1] : vector<8x8xf32> to vector<8xf32>
    %76 = vector.shape_cast %75 : vector<8xf32> to vector<8x1xf32>
    %77 = vector.broadcast %76 : vector<8x1xf32> to vector<8x8xf32>
    %78 = arith.subf %74, %77 : vector<8x8xf32>
    %79 = math.exp %78 : vector<8x8xf32>
    %cst_28 = arith.constant dense<0.000000e+00> : vector<8xf32>
    %80 = vector.multi_reduction <add>, %79, %cst_28 [1] : vector<8x8xf32> to vector<8xf32>
    %81 = vector.shape_cast %80 : vector<8xf32> to vector<8x1xf32>
    %82 = vector.broadcast %81 : vector<8x1xf32> to vector<8x8xf32>
    %83 = arith.divf %79, %82 : vector<8x8xf32>
    %cst_29 = arith.constant dense<0.000000e+00> : vector<8x128xf32>
    %84 = tpu.matmul %83, %60, %cst_29 {dimension_numbers = #tpu.dot_dimension_numbers<[1], [0], [0], [1], [0, 0, 1, 1], [], []>} : vector<8x8xf32>, vector<8x128xf32>, vector<8x128xf32> -> vector<8x128xf32>
    %85 = arith.addf %59, %84 : vector<8x128xf32>
    %86 = vector.extract_strided_slice %3 {offsets = [0, 384], sizes = [8, 128], strides = [1, 1]} : vector<8x512xf32> to vector<8x128xf32>
    %87 = vector.extract_strided_slice %5 {offsets = [0, 7], sizes = [8, 1], strides = [1, 1]} : vector<8x8xf32> to vector<8x1xf32>
    %88 = vector.extract_strided_slice %6 {offsets = [3, 0], sizes = [1, 8], strides = [1, 1]} : vector<8x8xf32> to vector<1x8xf32>
    %89 = vector.broadcast %87 : vector<8x1xf32> to vector<8x8xf32>
    %90 = vector.broadcast %88 : vector<1x8xf32> to vector<8x8xf32>
    %91 = arith.addf %89, %90 : vector<8x8xf32>
    %cst_30 = arith.constant 0.000000e+00 : f32
    %92 = vector.broadcast %cst_30 : f32 to vector<8x8xf32>
    %93 = arith.cmpf ogt, %91, %92 : vector<8x8xf32>
    %cst_31 = arith.constant 2.000000e-01 : f32
    %94 = vector.broadcast %cst_31 : f32 to vector<8x8xf32>
    %95 = arith.mulf %94, %91 : vector<8x8xf32>
    %96 = arith.select %93, %91, %95 : vector<8x8xi1>, vector<8x8xf32>
    %cst_32 = arith.constant 0.000000e+00 : f32
    %97 = vector.broadcast %cst_32 : f32 to vector<8x8xf32>
    %98 = arith.cmpf ogt, %0, %97 : vector<8x8xf32>
    %cst_33 = arith.constant -1.000000e+30 : f32
    %99 = vector.broadcast %cst_33 : f32 to vector<8x8xf32>
    %100 = arith.select %98, %96, %99 : vector<8x8xi1>, vector<8x8xf32>
    %cst_34 = arith.constant dense<0xFF800000> : vector<8xf32>
    %101 = vector.multi_reduction <maximumf>, %100, %cst_34 [1] : vector<8x8xf32> to vector<8xf32>
    %102 = vector.shape_cast %101 : vector<8xf32> to vector<8x1xf32>
    %103 = vector.broadcast %102 : vector<8x1xf32> to vector<8x8xf32>
    %104 = arith.subf %100, %103 : vector<8x8xf32>
    %105 = math.exp %104 : vector<8x8xf32>
    %cst_35 = arith.constant dense<0.000000e+00> : vector<8xf32>
    %106 = vector.multi_reduction <add>, %105, %cst_35 [1] : vector<8x8xf32> to vector<8xf32>
    %107 = vector.shape_cast %106 : vector<8xf32> to vector<8x1xf32>
    %108 = vector.broadcast %107 : vector<8x1xf32> to vector<8x8xf32>
    %109 = arith.divf %105, %108 : vector<8x8xf32>
    %cst_36 = arith.constant dense<0.000000e+00> : vector<8x128xf32>
    %110 = tpu.matmul %109, %86, %cst_36 {dimension_numbers = #tpu.dot_dimension_numbers<[1], [0], [0], [1], [0, 0, 1, 1], [], []>} : vector<8x8xf32>, vector<8x128xf32>, vector<8x128xf32> -> vector<8x128xf32>
    %111 = arith.addf %85, %110 : vector<8x128xf32>
    %cst_37 = arith.constant 2.500000e-01 : f32
    %112 = vector.broadcast %cst_37 : f32 to vector<8x128xf32>
    %113 = arith.mulf %111, %112 : vector<8x128xf32>
    %c0_38 = arith.constant 0 : index
    %c0_39 = arith.constant 0 : index
    %114 = vector.load %arg4[%c0_38, %c0_39] : memref<1x128xf32, #tpu.memory_space<vmem>>, vector<1x128xf32>
    %115 = vector.broadcast %114 : vector<1x128xf32> to vector<8x128xf32>
    %116 = arith.addf %113, %115 : vector<8x128xf32>
    %cst_40 = arith.constant 0.000000e+00 : f32
    %117 = vector.broadcast %cst_40 : f32 to vector<8x128xf32>
    %118 = arith.cmpf ogt, %116, %117 : vector<8x128xf32>
    %119 = math.exp %116 : vector<8x128xf32>
    %cst_41 = arith.constant 1.000000e+00 : f32
    %120 = vector.broadcast %cst_41 : f32 to vector<8x128xf32>
    %121 = arith.subf %119, %120 : vector<8x128xf32>
    %122 = arith.select %118, %116, %121 : vector<8x128xi1>, vector<8x128xf32>
    %c0_42 = arith.constant 0 : index
    %c0_43 = arith.constant 0 : index
    %123 = vector.load %arg5[%c0_42, %c0_43] : memref<128x512xf32, #tpu.memory_space<vmem>>, vector<128x512xf32>
    %cst_44 = arith.constant dense<0.000000e+00> : vector<8x512xf32>
    %124 = tpu.matmul %122, %123, %cst_44 {dimension_numbers = #tpu.dot_dimension_numbers<[1], [0], [0], [1], [0, 0, 1, 1], [], []>} : vector<8x128xf32>, vector<128x512xf32>, vector<8x512xf32> -> vector<8x512xf32>
    %c0_45 = arith.constant 0 : index
    %c0_46 = arith.constant 0 : index
    %125 = vector.load %arg6[%c0_45, %c0_46] : memref<512x8xf32, #tpu.memory_space<vmem>>, vector<512x8xf32>
    %cst_47 = arith.constant dense<0.000000e+00> : vector<8x8xf32>
    %126 = tpu.matmul %124, %125, %cst_47 {dimension_numbers = #tpu.dot_dimension_numbers<[1], [0], [0], [1], [0, 0, 1, 1], [], []>} : vector<8x512xf32>, vector<512x8xf32>, vector<8x8xf32> -> vector<8x8xf32>
    %127 = tpu.transpose %126, [1, 0] : vector<8x8xf32> -> vector<8x8xf32>
    %cst_48 = arith.constant 0.000000e+00 : f32
    %128 = vector.broadcast %cst_48 : f32 to vector<8x128xf32>
    %129 = vector.extract_strided_slice %124 {offsets = [0, 0], sizes = [8, 128], strides = [1, 1]} : vector<8x512xf32> to vector<8x128xf32>
    %130 = vector.extract_strided_slice %126 {offsets = [0, 4], sizes = [8, 1], strides = [1, 1]} : vector<8x8xf32> to vector<8x1xf32>
    %131 = vector.extract_strided_slice %127 {offsets = [0, 0], sizes = [1, 8], strides = [1, 1]} : vector<8x8xf32> to vector<1x8xf32>
    %132 = vector.broadcast %130 : vector<8x1xf32> to vector<8x8xf32>
    %133 = vector.broadcast %131 : vector<1x8xf32> to vector<8x8xf32>
    %134 = arith.addf %132, %133 : vector<8x8xf32>
    %cst_49 = arith.constant 0.000000e+00 : f32
    %135 = vector.broadcast %cst_49 : f32 to vector<8x8xf32>
    %136 = arith.cmpf ogt, %134, %135 : vector<8x8xf32>
    %cst_50 = arith.constant 2.000000e-01 : f32
    %137 = vector.broadcast %cst_50 : f32 to vector<8x8xf32>
    %138 = arith.mulf %137, %134 : vector<8x8xf32>
    %139 = arith.select %136, %134, %138 : vector<8x8xi1>, vector<8x8xf32>
    %cst_51 = arith.constant 0.000000e+00 : f32
    %140 = vector.broadcast %cst_51 : f32 to vector<8x8xf32>
    %141 = arith.cmpf ogt, %0, %140 : vector<8x8xf32>
    %cst_52 = arith.constant -1.000000e+30 : f32
    %142 = vector.broadcast %cst_52 : f32 to vector<8x8xf32>
    %143 = arith.select %141, %139, %142 : vector<8x8xi1>, vector<8x8xf32>
    %cst_53 = arith.constant dense<0xFF800000> : vector<8xf32>
    %144 = vector.multi_reduction <maximumf>, %143, %cst_53 [1] : vector<8x8xf32> to vector<8xf32>
    %145 = vector.shape_cast %144 : vector<8xf32> to vector<8x1xf32>
    %146 = vector.broadcast %145 : vector<8x1xf32> to vector<8x8xf32>
    %147 = arith.subf %143, %146 : vector<8x8xf32>
    %148 = math.exp %147 : vector<8x8xf32>
    %cst_54 = arith.constant dense<0.000000e+00> : vector<8xf32>
    %149 = vector.multi_reduction <add>, %148, %cst_54 [1] : vector<8x8xf32> to vector<8xf32>
    %150 = vector.shape_cast %149 : vector<8xf32> to vector<8x1xf32>
    %151 = vector.broadcast %150 : vector<8x1xf32> to vector<8x8xf32>
    %152 = arith.divf %148, %151 : vector<8x8xf32>
    %cst_55 = arith.constant dense<0.000000e+00> : vector<8x128xf32>
    %153 = tpu.matmul %152, %129, %cst_55 {dimension_numbers = #tpu.dot_dimension_numbers<[1], [0], [0], [1], [0, 0, 1, 1], [], []>} : vector<8x8xf32>, vector<8x128xf32>, vector<8x128xf32> -> vector<8x128xf32>
    %154 = arith.addf %128, %153 : vector<8x128xf32>
    %155 = vector.extract_strided_slice %124 {offsets = [0, 128], sizes = [8, 128], strides = [1, 1]} : vector<8x512xf32> to vector<8x128xf32>
    %156 = vector.extract_strided_slice %126 {offsets = [0, 5], sizes = [8, 1], strides = [1, 1]} : vector<8x8xf32> to vector<8x1xf32>
    %157 = vector.extract_strided_slice %127 {offsets = [1, 0], sizes = [1, 8], strides = [1, 1]} : vector<8x8xf32> to vector<1x8xf32>
    %158 = vector.broadcast %156 : vector<8x1xf32> to vector<8x8xf32>
    %159 = vector.broadcast %157 : vector<1x8xf32> to vector<8x8xf32>
    %160 = arith.addf %158, %159 : vector<8x8xf32>
    %cst_56 = arith.constant 0.000000e+00 : f32
    %161 = vector.broadcast %cst_56 : f32 to vector<8x8xf32>
    %162 = arith.cmpf ogt, %160, %161 : vector<8x8xf32>
    %cst_57 = arith.constant 2.000000e-01 : f32
    %163 = vector.broadcast %cst_57 : f32 to vector<8x8xf32>
    %164 = arith.mulf %163, %160 : vector<8x8xf32>
    %165 = arith.select %162, %160, %164 : vector<8x8xi1>, vector<8x8xf32>
    %cst_58 = arith.constant 0.000000e+00 : f32
    %166 = vector.broadcast %cst_58 : f32 to vector<8x8xf32>
    %167 = arith.cmpf ogt, %0, %166 : vector<8x8xf32>
    %cst_59 = arith.constant -1.000000e+30 : f32
    %168 = vector.broadcast %cst_59 : f32 to vector<8x8xf32>
    %169 = arith.select %167, %165, %168 : vector<8x8xi1>, vector<8x8xf32>
    %cst_60 = arith.constant dense<0xFF800000> : vector<8xf32>
    %170 = vector.multi_reduction <maximumf>, %169, %cst_60 [1] : vector<8x8xf32> to vector<8xf32>
    %171 = vector.shape_cast %170 : vector<8xf32> to vector<8x1xf32>
    %172 = vector.broadcast %171 : vector<8x1xf32> to vector<8x8xf32>
    %173 = arith.subf %169, %172 : vector<8x8xf32>
    %174 = math.exp %173 : vector<8x8xf32>
    %cst_61 = arith.constant dense<0.000000e+00> : vector<8xf32>
    %175 = vector.multi_reduction <add>, %174, %cst_61 [1] : vector<8x8xf32> to vector<8xf32>
    %176 = vector.shape_cast %175 : vector<8xf32> to vector<8x1xf32>
    %177 = vector.broadcast %176 : vector<8x1xf32> to vector<8x8xf32>
    %178 = arith.divf %174, %177 : vector<8x8xf32>
    %cst_62 = arith.constant dense<0.000000e+00> : vector<8x128xf32>
    %179 = tpu.matmul %178, %155, %cst_62 {dimension_numbers = #tpu.dot_dimension_numbers<[1], [0], [0], [1], [0, 0, 1, 1], [], []>} : vector<8x8xf32>, vector<8x128xf32>, vector<8x128xf32> -> vector<8x128xf32>
    %180 = arith.addf %154, %179 : vector<8x128xf32>
    %181 = vector.extract_strided_slice %124 {offsets = [0, 256], sizes = [8, 128], strides = [1, 1]} : vector<8x512xf32> to vector<8x128xf32>
    %182 = vector.extract_strided_slice %126 {offsets = [0, 6], sizes = [8, 1], strides = [1, 1]} : vector<8x8xf32> to vector<8x1xf32>
    %183 = vector.extract_strided_slice %127 {offsets = [2, 0], sizes = [1, 8], strides = [1, 1]} : vector<8x8xf32> to vector<1x8xf32>
    %184 = vector.broadcast %182 : vector<8x1xf32> to vector<8x8xf32>
    %185 = vector.broadcast %183 : vector<1x8xf32> to vector<8x8xf32>
    %186 = arith.addf %184, %185 : vector<8x8xf32>
    %cst_63 = arith.constant 0.000000e+00 : f32
    %187 = vector.broadcast %cst_63 : f32 to vector<8x8xf32>
    %188 = arith.cmpf ogt, %186, %187 : vector<8x8xf32>
    %cst_64 = arith.constant 2.000000e-01 : f32
    %189 = vector.broadcast %cst_64 : f32 to vector<8x8xf32>
    %190 = arith.mulf %189, %186 : vector<8x8xf32>
    %191 = arith.select %188, %186, %190 : vector<8x8xi1>, vector<8x8xf32>
    %cst_65 = arith.constant 0.000000e+00 : f32
    %192 = vector.broadcast %cst_65 : f32 to vector<8x8xf32>
    %193 = arith.cmpf ogt, %0, %192 : vector<8x8xf32>
    %cst_66 = arith.constant -1.000000e+30 : f32
    %194 = vector.broadcast %cst_66 : f32 to vector<8x8xf32>
    %195 = arith.select %193, %191, %194 : vector<8x8xi1>, vector<8x8xf32>
    %cst_67 = arith.constant dense<0xFF800000> : vector<8xf32>
    %196 = vector.multi_reduction <maximumf>, %195, %cst_67 [1] : vector<8x8xf32> to vector<8xf32>
    %197 = vector.shape_cast %196 : vector<8xf32> to vector<8x1xf32>
    %198 = vector.broadcast %197 : vector<8x1xf32> to vector<8x8xf32>
    %199 = arith.subf %195, %198 : vector<8x8xf32>
    %200 = math.exp %199 : vector<8x8xf32>
    %cst_68 = arith.constant dense<0.000000e+00> : vector<8xf32>
    %201 = vector.multi_reduction <add>, %200, %cst_68 [1] : vector<8x8xf32> to vector<8xf32>
    %202 = vector.shape_cast %201 : vector<8xf32> to vector<8x1xf32>
    %203 = vector.broadcast %202 : vector<8x1xf32> to vector<8x8xf32>
    %204 = arith.divf %200, %203 : vector<8x8xf32>
    %cst_69 = arith.constant dense<0.000000e+00> : vector<8x128xf32>
    %205 = tpu.matmul %204, %181, %cst_69 {dimension_numbers = #tpu.dot_dimension_numbers<[1], [0], [0], [1], [0, 0, 1, 1], [], []>} : vector<8x8xf32>, vector<8x128xf32>, vector<8x128xf32> -> vector<8x128xf32>
    %206 = arith.addf %180, %205 : vector<8x128xf32>
    %207 = vector.extract_strided_slice %124 {offsets = [0, 384], sizes = [8, 128], strides = [1, 1]} : vector<8x512xf32> to vector<8x128xf32>
    %208 = vector.extract_strided_slice %126 {offsets = [0, 7], sizes = [8, 1], strides = [1, 1]} : vector<8x8xf32> to vector<8x1xf32>
    %209 = vector.extract_strided_slice %127 {offsets = [3, 0], sizes = [1, 8], strides = [1, 1]} : vector<8x8xf32> to vector<1x8xf32>
    %210 = vector.broadcast %208 : vector<8x1xf32> to vector<8x8xf32>
    %211 = vector.broadcast %209 : vector<1x8xf32> to vector<8x8xf32>
    %212 = arith.addf %210, %211 : vector<8x8xf32>
    %cst_70 = arith.constant 0.000000e+00 : f32
    %213 = vector.broadcast %cst_70 : f32 to vector<8x8xf32>
    %214 = arith.cmpf ogt, %212, %213 : vector<8x8xf32>
    %cst_71 = arith.constant 2.000000e-01 : f32
    %215 = vector.broadcast %cst_71 : f32 to vector<8x8xf32>
    %216 = arith.mulf %215, %212 : vector<8x8xf32>
    %217 = arith.select %214, %212, %216 : vector<8x8xi1>, vector<8x8xf32>
    %cst_72 = arith.constant 0.000000e+00 : f32
    %218 = vector.broadcast %cst_72 : f32 to vector<8x8xf32>
    %219 = arith.cmpf ogt, %0, %218 : vector<8x8xf32>
    %cst_73 = arith.constant -1.000000e+30 : f32
    %220 = vector.broadcast %cst_73 : f32 to vector<8x8xf32>
    %221 = arith.select %219, %217, %220 : vector<8x8xi1>, vector<8x8xf32>
    %cst_74 = arith.constant dense<0xFF800000> : vector<8xf32>
    %222 = vector.multi_reduction <maximumf>, %221, %cst_74 [1] : vector<8x8xf32> to vector<8xf32>
    %223 = vector.shape_cast %222 : vector<8xf32> to vector<8x1xf32>
    %224 = vector.broadcast %223 : vector<8x1xf32> to vector<8x8xf32>
    %225 = arith.subf %221, %224 : vector<8x8xf32>
    %226 = math.exp %225 : vector<8x8xf32>
    %cst_75 = arith.constant dense<0.000000e+00> : vector<8xf32>
    %227 = vector.multi_reduction <add>, %226, %cst_75 [1] : vector<8x8xf32> to vector<8xf32>
    %228 = vector.shape_cast %227 : vector<8xf32> to vector<8x1xf32>
    %229 = vector.broadcast %228 : vector<8x1xf32> to vector<8x8xf32>
    %230 = arith.divf %226, %229 : vector<8x8xf32>
    %cst_76 = arith.constant dense<0.000000e+00> : vector<8x128xf32>
    %231 = tpu.matmul %230, %207, %cst_76 {dimension_numbers = #tpu.dot_dimension_numbers<[1], [0], [0], [1], [0, 0, 1, 1], [], []>} : vector<8x8xf32>, vector<8x128xf32>, vector<8x128xf32> -> vector<8x128xf32>
    %232 = arith.addf %206, %231 : vector<8x128xf32>
    %cst_77 = arith.constant 2.500000e-01 : f32
    %233 = vector.broadcast %cst_77 : f32 to vector<8x128xf32>
    %234 = arith.mulf %232, %233 : vector<8x128xf32>
    %c0_78 = arith.constant 0 : index
    %c0_79 = arith.constant 0 : index
    %235 = vector.load %arg7[%c0_78, %c0_79] : memref<1x128xf32, #tpu.memory_space<vmem>>, vector<1x128xf32>
    %236 = vector.broadcast %235 : vector<1x128xf32> to vector<8x128xf32>
    %237 = arith.addf %234, %236 : vector<8x128xf32>
    %c0_80 = arith.constant 0 : index
    %c0_81 = arith.constant 0 : index
    %238 = vector.load %arg8[%c0_80, %c0_81] : memref<8x128xf32, #tpu.memory_space<vmem>>, vector<8x128xf32>
    tpu.vector_store %arg8[%c0_80, %c0_81], %237 {strides = array<i32>} : memref<8x128xf32, #tpu.memory_space<vmem>>, vector<8x128xf32>,
    return
  }
}

</mosaic_0001>

<bundles_post_ra>
// kernel: tpu_custom_call.1
= control target key start
LH: loop header
LB: loop body
LE: loop exit
PB: predicated region body
PF: predicated region fallthrough
CT: control target
= control target key end

     0   :  { %vm36_vm0 = vcmask 64512   ;;  %v2168_v6 = vmov 0.0   ;;  %s2960_s0 = inlined_call_operand.vmem [shape: f32[8,8], index: 0, kind: input, shape index: {}]   ;;  %s2961_s1 = inlined_call_operand.vmem [shape: f32[8,8], index: 1, kind: input, shape index: {}]   ;;  %s2962_s2 = inlined_call_operand.vmem [shape: f32[8,512], index: 2, kind: input, shape index: {}]   ;;  %s2963_s3 = inlined_call_operand.vmem [shape: f32[512,8], index: 3, kind: input, shape index: {}]   ;;  %s2964_s4 = inlined_call_operand.vmem [shape: f32[1,128], index: 4, kind: input, shape index: {}]   ;;  %s2965_s5 = inlined_call_operand.vmem [shape: f32[128,512], index: 5, kind: input, shape index: {}]   ;;  %s2966_s6 = inlined_call_operand.vmem [shape: f32[512,8], index: 6, kind: input, shape index: {}]   ;;  %s2967_s7 = inlined_call_operand.vmem [shape: f32[1,128], index: 7, kind: input, shape index: {}]   ;;  %s2968_s8 = inlined_call_operand.hbm [shape: f32[8,128], index: 8, kind: output, shape index: {}]  }
   0x1   :  { %v33_v0 = vld [vmem:[%s2962_s2 + $0x8] sm:$0xff]  ;;  %v35_v1 = vld [vmem:[%s2962_s2 + $0x18] sm:$0xff]  ;;  %v32_v2 = vld [vmem:[%s2962_s2] sm:$0xff]  ;;  %104 = vmatprep.mubr.f32.mxu0 %v2168_v6  ;;  %175 = vmatprep.mubr.f32.mxu1 %v2168_v6 }
   0x2   :  { %40 = vmatprep.subr.mxu0 %v33_v0  ;;  %111 = vmatprep.subr.mxu1 %v35_v1  ;;  %v34_v3 = vld [vmem:[%s2962_s2 + $0x10] sm:$0xff]  ;;  %v31_v4 = vld [vmem:[%s2960_s0] sm:$0xff]  ;;  %v199_v7 = vld [vmem:[%s2963_s3 + $0x88] sm:$0xff] }
   0x3   :  { %v198_v5 = vld [vmem:[%s2963_s3 + $0x80] sm:$0xff]  ;;  %41 = vmatpush1.msra.mxu0 %v32_v2  ;;  %v183_v9 = vld [vmem:[%s2963_s3 + $0x8] sm:$0xff]  ;;  %112 = vmatpush1.msra.mxu1 %v34_v3  ;;  %v200_v17 = vld [vmem:[%s2963_s3 + $0x90] sm:$0xff] }
   0x4   :  { %v182_v8 = vld [vmem:[%s2963_s3] sm:$0xff]  ;;  %v1890_v10 = vpack.c.bf16 %v199_v7, %v198_v5  ;;  %v231_v13 = vld [vmem:[%s2963_s3 + $0x188] sm:$0xff]  ;;  %1681 = vmatmul.mubr.msk.f32.vlgmr.msra.gmra.mrb[0].mxu0 %vm36_vm0, %v31_v4  ;;  %1682 = vmatmul.mubr.msk.f32.vlgmr.msra.gmra.mrb[0].mxu1 %vm36_vm0, %v31_v4  ;;  %v201_v18 = vld [vmem:[%s2963_s3 + $0x98] sm:$0xff] }
   0x5   :  { %v1892_v11 = vpack.c.bf16 %v183_v9, %v182_v8  ;;  %v230_v12 = vld [vmem:[%s2963_s3 + $0x180] sm:$0xff]  ;;  %v215_v16 = vld [vmem:[%s2963_s3 + $0x108] sm:$0xff]  ;;  %v1894_v20 = vpack.c.bf16 %v201_v18, %v200_v17  ;;  %v184_v21 = vld [vmem:[%s2963_s3 + $0x10] sm:$0xff] }
   0x6   :  { %v214_v14 = vld [vmem:[%s2963_s3 + $0x100] sm:$0xff]  ;;  %v1922_v15 = vpack.c.bf16 %v231_v13, %v230_v12  ;;  %1891 = vmatprep.subr.bf16.mxu0 %v1890_v10  ;;  %v185_v22 = vld [vmem:[%s2963_s3 + $0x18] sm:$0xff]  ;;  %v232_v23 = vld [vmem:[%s2963_s3 + $0x190] sm:$0xff] }
   0x7   :  { %v1924_v19 = vpack.c.bf16 %v215_v16, %v214_v14  ;;  %1893 = vmatpush3.bf16.msra.mxu0 %v1892_v11  ;;  %v1896_v24 = vpack.c.bf16 %v185_v22, %v184_v21  ;;  %v233_v25 = vld [vmem:[%s2963_s3 + $0x198] sm:$0xff]  ;;  %v216_v26 = vld [vmem:[%s2963_s3 + $0x110] sm:$0xff]  ;;  %v202_v30 = vld [vmem:[%s2963_s3 + $0xa0] sm:$0xff] }
   0x8   :  { %1923 = vmatprep.subr.bf16.mxu1 %v1922_v15  ;;  %v217_v27 = vld [vmem:[%s2963_s3 + $0x118] sm:$0xff]  ;;  %1895 = vmatprep.subr.bf16.mxu0 %v1894_v20  ;;  %v1926_v28 = vpack.c.bf16 %v233_v25, %v232_v23  ;;  %v203_v31 = vld [vmem:[%s2963_s3 + $0xa8] sm:$0xff]  ;;  %v186_v32 = vld [vmem:[%s2963_s3 + $0x20] sm:$0xff] }
   0x9   :  { %1925 = vmatpush3.bf16.msra.mxu1 %v1924_v19  ;;  %v1928_v29 = vpack.c.bf16 %v217_v27, %v216_v26  ;;  %v1898_v33 = vpack.c.bf16 %v203_v31, %v202_v30  ;;  %v187_v34 = vld [vmem:[%s2963_s3 + $0x28] sm:$0xff]  ;;  %v234_v35 = vld [vmem:[%s2963_s3 + $0x1a0] sm:$0xff]  ;;  %v204_v40 = vld [vmem:[%s2963_s3 + $0xb0] sm:$0xff] }
   0xa   :  { %v235_v36 = vld [vmem:[%s2963_s3 + $0x1a8] sm:$0xff]  ;;  %1927 = vmatprep.subr.bf16.mxu1 %v1926_v28  ;;  %v218_v38 = vld [vmem:[%s2963_s3 + $0x120] sm:$0xff]  ;;  %v1900_v41 = vpack.c.bf16 %v187_v34, %v186_v32  ;;  %v205_v42 = vld [vmem:[%s2963_s3 + $0xb8] sm:$0xff] }
   0xb   :  { %v1930_v37 = vpack.c.bf16 %v235_v36, %v234_v35  ;;  %v219_v39 = vld [vmem:[%s2963_s3 + $0x128] sm:$0xff]  ;;  %1897 = vmatpush3.bf16.msra.mxu0 %v1896_v24  ;;  %v188_v43 = vld [vmem:[%s2963_s3 + $0x30] sm:$0xff]  ;;  %v189_v44 = vld [vmem:[%s2963_s3 + $0x38] sm:$0xff]  ;;  %v1902_v46 = vpack.c.bf16 %v205_v42, %v204_v40 }
   0xc   :  { %1899 = vmatprep.subr.bf16.mxu0 %v1898_v33  ;;  %v1932_v45 = vpack.c.bf16 %v219_v39, %v218_v38  ;;  %v236_v47 = vld [vmem:[%s2963_s3 + $0x1b0] sm:$0xff]  ;;  %v237_v48 = vld [vmem:[%s2963_s3 + $0x1b8] sm:$0xff]  ;;  %v206_v52 = vld [vmem:[%s2963_s3 + $0xc0] sm:$0xff]  ;;  %v1904_v55 = vpack.c.bf16 %v189_v44, %v188_v43 }
   0xd   :  { %1929 = vmatpush3.bf16.msra.mxu1 %v1928_v29  ;;  %v220_v49 = vld [vmem:[%s2963_s3 + $0x130] sm:$0xff]  ;;  %v1934_v50 = vpack.c.bf16 %v237_v48, %v236_v47  ;;  %v221_v51 = vld [vmem:[%s2963_s3 + $0x138] sm:$0xff]  ;;  %v207_v53 = vld [vmem:[%s2963_s3 + $0xc8] sm:$0xff] }
   0xe   :  { %1931 = vmatprep.subr.bf16.mxu1 %v1930_v37  ;;  %v238_v54 = vld [vmem:[%s2963_s3 + $0x1c0] sm:$0xff]  ;;  %v239_v56 = vld [vmem:[%s2963_s3 + $0x1c8] sm:$0xff]  ;;  %v1936_v57 = vpack.c.bf16 %v221_v51, %v220_v49  ;;  %v1906_v58 = vpack.c.bf16 %v207_v53, %v206_v52  ;;  %v208_v0 = vld [vmem:[%s2963_s3 + $0xd0] sm:$0xff] }
   0xf   :  { %1901 = vmatpush3.bf16.msra.mxu0 %v1900_v41  ;;  %v190_v59 = vld [vmem:[%s2963_s3 + $0x40] sm:$0xff]  ;;  %v191_v60 = vld [vmem:[%s2963_s3 + $0x48] sm:$0xff]  ;;  %v1938_v62 = vpack.c.bf16 %v239_v56, %v238_v54  ;;  %v209_v1 = vld [vmem:[%s2963_s3 + $0xd8] sm:$0xff] }
  0x10   :  { %1903 = vmatprep.subr.bf16.mxu0 %v1902_v46  ;;  %v222_v61 = vld [vmem:[%s2963_s3 + $0x140] sm:$0xff]  ;;  %v223_v63 = vld [vmem:[%s2963_s3 + $0x148] sm:$0xff]  ;;  %v240_v2 = vld [vmem:[%s2963_s3 + $0x1d0] sm:$0xff]  ;;  %v1908_v4 = vpack.c.bf16 %v191_v60, %v190_v59  ;;  %v1910_v7 = vpack.c.bf16 %v209_v1, %v208_v0 }
  0x11   :  { %1933 = vmatpush3.bf16.msra.mxu1 %v1932_v45  ;;  %v241_v3 = vld [vmem:[%s2963_s3 + $0x1d8] sm:$0xff]  ;;  %v1940_v5 = vpack.c.bf16 %v223_v63, %v222_v61  ;;  %v192_v8 = vld [vmem:[%s2963_s3 + $0x50] sm:$0xff]  ;;  %v210_v13 = vld [vmem:[%s2963_s3 + $0xe0] sm:$0xff] }
  0x12   :  { %1935 = vmatprep.subr.bf16.mxu1 %v1934_v50  ;;  %v193_v9 = vld [vmem:[%s2963_s3 + $0x58] sm:$0xff]  ;;  %v224_v10 = vld [vmem:[%s2963_s3 + $0x150] sm:$0xff]  ;;  %v1942_v11 = vpack.c.bf16 %v241_v3, %v240_v2  ;;  %v211_v14 = vld [vmem:[%s2963_s3 + $0xe8] sm:$0xff] }
  0x13   :  { %1905 = vmatpush3.bf16.msra.mxu0 %v1904_v55  ;;  %v225_v12 = vld [vmem:[%s2963_s3 + $0x158] sm:$0xff]  ;;  %v242_v15 = vld [vmem:[%s2963_s3 + $0x1e0] sm:$0xff]  ;;  %v243_v16 = vld [vmem:[%s2963_s3 + $0x1e8] sm:$0xff]  ;;  %v1912_v17 = vpack.c.bf16 %v193_v9, %v192_v8 }
  0x14   :  { %1907 = vmatprep.subr.bf16.mxu0 %v1906_v58 }
  0x15   :  { %1937 = vmatpush3.bf16.msra.mxu1 %v1936_v57 }
  0x16   :  { %1939 = vmatprep.subr.bf16.mxu1 %v1938_v62 }
  0x17   :  { %1909 = vmatpush3.bf16.msra.mxu0 %v1908_v4 }
  0x18   :  { %13 = vsyncpa [#allocation3], 0  ;;  %1911 = vmatprep.subr.bf16.mxu0 %v1910_v7  ;;  %v1944_v18 = vpack.c.bf16 %v225_v12, %v224_v10  ;;  %v1914_v19 = vpack.c.bf16 %v211_v14, %v210_v13  ;;  %v194_v20 = vld [vmem:[%s2963_s3 + $0x60] sm:$0xff]  ;;  %v195_v21 = vld [vmem:[%s2963_s3 + $0x68] sm:$0xff]  ;;  %v1946_v23 = vpack.c.bf16 %v243_v16, %v242_v15  ;;  %v2169_v43 = vmov 6   ;;  %s2174_s14 = smov [#allocation2]  }
  0x19   :  { %1941 = vmatpush3.bf16.msra.mxu1 %v1940_v5  ;;  %v226_v22 = vld [vmem:[%s2963_s3 + $0x160] sm:$0xff]  ;;  %v227_v24 = vld [vmem:[%s2963_s3 + $0x168] sm:$0xff]  ;;  %v212_v25 = vld [vmem:[%s2963_s3 + $0xf0] sm:$0xff]  ;;  %v1916_v29 = vpack.c.bf16 %v195_v21, %v194_v20  ;;  %2103 = vset.pattern.permute.xlu1 %v2169_v43  ;;  %v2170_v44 = vmov 5   ;;  %v2171_v52 = vmov 7   ;;  %v2172_v53 = vmov 4  }
  0x1a   :  { %1943 = vmatprep.subr.bf16.mxu1 %v1942_v11  ;;  %v213_v26 = vld [vmem:[%s2963_s3 + $0xf8] sm:$0xff]  ;;  %v244_v27 = vld [vmem:[%s2963_s3 + $0x1f0] sm:$0xff]  ;;  %v1948_v30 = vpack.c.bf16 %v227_v24, %v226_v22  ;;  %2101 = vset.pattern.permute.xlu0 %v2170_v44  ;;  %v423_v54 = vlaneseq  ;;  %v2462_v4 = vld [vmem:[%s2961_s1] sm:$0xff]  ;;  %vm2173_vm6 = vmmov 0   ;;  %s1673_s15 = sshll.u32 %s2174_s14, 4  ;;  %s1674_s15 = int_to_ptr.vmem [resolvable:$true] %s1673_s15 }
  0x1b   :  { %v245_v28 = vld [vmem:[%s2963_s3 + $0x1f8] sm:$0xff]  ;;  %1913 = vmatpush3.bf16.msra.mxu0 %v1912_v17  ;;  %v1918_v31 = vpack.c.bf16 %v213_v26, %v212_v25  ;;  %v196_v32 = vld [vmem:[%s2963_s3 + $0x70] sm:$0xff]  ;;  %vm431_vm1 = vcmp.gt.f32.partialorder %v2462_v4, 0.0  ;;  %s2144_s16 = scalar_lea.vmem %s1674_s15, 128  ;;  %p2149_p1 = scmp.lt.s32.totalorder %s1674_s15, %s1674_s15 }
  0x1c   :  { %1915 = vmatprep.subr.bf16.mxu0 %v1914_v19  ;;  %v197_v33 = vld [vmem:[%s2963_s3 + $0x78] sm:$0xff]  ;;  %v1950_v34 = vpack.c.bf16 %v245_v28, %v244_v27  ;;  %v228_v36 = vld [vmem:[%s2963_s3 + $0x170] sm:$0xff]  ;;  %v2445_v56 = vshrl.u32 %v423_v54, 7  ;;  %p2145_p0 = scmp.ne.s32.totalorder %s1674_s15, %s2144_s16  ;;  %p2150_p2 = scmp.lt.s32.totalorder %s2144_s16, %s2144_s16 }
  0x1d   :  { %1945 = vmatpush3.bf16.msra.mxu1 %v1944_v18  ;;  %v1920_v35 = vpack.c.bf16 %v197_v33, %v196_v32  ;;  %v229_v37 = vld [vmem:[%s2963_s3 + $0x178] sm:$0xff] }
  0x1e   :  { %1947 = vmatprep.subr.bf16.mxu1 %v1946_v23  ;;  %v1952_v38 = vpack.c.bf16 %v229_v37, %v228_v36  ;;  %v425_v59 = vsub.s32 0, %v2445_v56  ;;  %v450_v60 = vsub.s32 1, %v2445_v56  ;;  %v620_v61 = vsub.s32 2, %v2445_v56  ;;  %p2151_p3 = por %p2150_p2, %p2149_p1 }
  0x1f   :  { %1917 = vmatpush3.bf16.msra.mxu0 %v1916_v29  ;;  %v718_v62 = vsub.s32 3, %v2445_v56 }
  0x20   :  { %1919 = vmatprep.subr.bf16.mxu0 %v1918_v31  ;;  %p2152_p4 = pnand %p2151_p3, %p2145_p0 }
  0x21   :  { %1949 = vmatpush3.bf16.msra.mxu1 %v1948_v30 }
  0x22   :  { %1951 = vmatprep.subr.bf16.mxu1 %v1950_v34 }
  0x23   :  { %1921 = vmatpush3.bf16.msra.mxu0 %v1920_v35 }
  0x24   :  { %1850 = vmatprep.subr.mxu0 %v2168_v6 }
  0x25   :  { %1953 = vmatpush3.bf16.msra.mxu1 %v1952_v38 }
  0xd7   :  { %v2432_v39 = vpop.f32.mrb[0].mxu0  ;;  %v2434_v40 = vpop.f32.mrb[0].mxu1 }
  0xd8   :  { %v108_v41 = vpop.f32.mrb[1].mxu0  ;;  %v2436_v42 = vpop.f32.mrb[1].mxu1 }
  0xd9   :  { %310 = vmatprep.mubr.f32.mxu0 %v108_v41  ;;  %380 = vmatprep.mubr.f32.mxu1 %v2436_v42 }
  0xda   :  { %311 = vmatmul.mubr.f32.vlgmr.msra.gmra.mrb[2].mxu0 %v2432_v39  ;;  %381 = vmatmul.mubr.f32.vlgmr.msra.gmra.mrb[2].mxu1 %v2434_v40 }
  0xdb   :  { %1851 = vmatpush3.msra.mxu0 %v108_v41  ;;  %952 = vmatprep.mubr.f32.mxu1 %v2168_v6 }
  0xdc   :  { %1855 = vmatprep.subr.mxu0 %v2168_v6  ;;  %1852 = vmatprep.mubr.msk.f32.mxu0 %vm2173_vm6, %v2168_v6 }
 0x1ad   :  { %v1726_v45 = vpop.f32.mrb[2].mxu0  ;;  %v1761_v46 = vpop.f32.mrb[2].mxu1 }
 0x1ae   :  { %v1727_v47 = vpop.f32.mrb[3].mxu0  ;;  %v1762_v48 = vpop.f32.mrb[3].mxu1 }
 0x1af   :  { %v1728_v49 = vadd.f32 %v1727_v47, %v1726_v45  ;;  %v1763_v50 = vadd.f32 %v1762_v48, %v1761_v46 }
 0x1b1   :  { %v383_v51 = vadd.f32 %v1763_v50, %v1728_v49 }
 0x1b3   :  { %615 = vperm.xlu1 %2103, %v383_v51   ;;  %445 = vperm.xlu0 %2101, %v383_v51  }
 0x1b7   :  { %2104 = vset.pattern.permute.xlu1 %v2171_v52  ;;  %2102 = vset.pattern.permute.xlu0 %v2172_v53 }
 0x1b8   :  { %713 = vperm.xlu1 %2104, %v383_v51   ;;  %420 = vperm.xlu0 %2102, %v383_v51  }
 0x1bc   :  { %2105 = vset.pattern.permute.xlu0 %v2170_v44 }
 0x1e1   :  { %386 = vxpose.xlu1.b32.start.end [1/1] (short) (narrow) %v383_v51, 8  ;;  %v825_v51 = vld [vmem:[%s2965_s5 + $0x8] sm:$0xff] }
 0x1ff   :  { %2106 = vset.pattern.permute.xlu1 %v2172_v53  ;;  %v829_v53 = vld [vmem:[%s2965_s5 + $0x28] sm:$0xff] }
 0x200   :  { %v1954_v54 = vpack.c.bf16 %v829_v53, %v825_v51 }
 0x202   :  { %1955 = vmatprep.subr.bf16.mxu1 %v1954_v54  ;;  %v850_v54 = vld [vmem:[%s2965_s5 + $0xd0] sm:$0xff] }
 0x232   :  { %v616_v55 = vpop.permute.xlu1 %615  ;;  %v446_v57 = vpop.permute.xlu0 %445 }
 0x237   :  { %v714_v58 = vpop.permute.xlu1 %713  ;;  %v421_v5 = vpop.permute.xlu0 %420 }
 0x261   :  { %v402_v63 = vpop.trf.xlu1 }
 0x262   :  { %v426_v0 = vrot.slane %v402_v63, %v425_v59  ;;  %v451_v1 = vrot.slane %v402_v63, %v450_v60  ;;  %v621_v2 = vrot.slane %v402_v63, %v620_v61  ;;  %v719_v3 = vrot.slane %v402_v63, %v718_v62  ;;  %v833_v63 = vld [vmem:[%s2965_s5 + $0x48] sm:$0xff] }
 0x264   :  { %v720_v7 = vadd.f32 %v719_v3, %v714_v58  ;;  %v452_v8 = vadd.f32 %v451_v1, %v446_v57  ;;  %v427_v9 = vadd.f32 %v426_v0, %v421_v5  ;;  %v622_v10 = vadd.f32 %v621_v2, %v616_v55  ;;  %v824_v55 = vld [vmem:[%s2965_s5] sm:$0xff]  ;;  %v837_v0 = vld [vmem:[%s2965_s5 + $0x68] sm:$0xff] }
 0x265   :  { %v828_v57 = vld [vmem:[%s2965_s5 + $0x20] sm:$0xff]  ;;  %v1958_v1 = vpack.c.bf16 %v837_v0, %v833_v63  ;;  %v861_v63 = vld [vmem:[%s2965_s5 + $0x128] sm:$0xff]  ;;  %v859_v0 = vld [vmem:[%s2965_s5 + $0x118] sm:$0xff] }
 0x266   :  { %vm721_vm2 = vcmp.gt.f32.partialorder %v720_v7, 0.0  ;;  %v722_v11 = vmul.f32 0.2, %v720_v7  ;;  %vm453_vm3 = vcmp.gt.f32.partialorder %v452_v8, 0.0  ;;  %v454_v12 = vmul.f32 0.2, %v452_v8 }
 0x267   :  { %vm428_vm4 = vcmp.gt.f32.partialorder %v427_v9, 0.0  ;;  %v429_v13 = vmul.f32 0.2, %v427_v9  ;;  %v624_v16 = vmul.f32 0.2, %v622_v10  ;;  %vm623_vm5 = vcmp.gt.f32.partialorder %v622_v10, 0.0 }
 0x268   :  { %v723_v14 = vsel %vm721_vm2, %v720_v7, %v722_v11  ;;  %v455_v15 = vsel %vm453_vm3, %v452_v8, %v454_v12  ;;  %v1956_v58 = vpack.c.bf16 %v828_v57, %v824_v55  ;;  %v832_v2 = vld [vmem:[%s2965_s5 + $0x40] sm:$0xff]  ;;  %v841_v7 = vld [vmem:[%s2965_s5 + $0x88] sm:$0xff]  ;;  %v854_v55 = vld [vmem:[%s2965_s5 + $0xf0] sm:$0xff] }
 0x269   :  { %v724_v17 = vsel %vm431_vm1, %v723_v14, -1e+30  ;;  %v456_v18 = vsel %vm431_vm1, %v455_v15, -1e+30  ;;  %v430_v19 = vsel %vm428_vm4, %v427_v9, %v429_v13  ;;  %v625_v23 = vsel %vm623_vm5, %v622_v10, %v624_v16  ;;  %v836_v3 = vld [vmem:[%s2965_s5 + $0x60] sm:$0xff]  ;;  %v845_v8 = vld [vmem:[%s2965_s5 + $0xa8] sm:$0xff] }
 0x26a   :  { %v725_v20 = vsel %vm36_vm0, %v724_v17, -inf  ;;  %v457_v21 = vsel %vm36_vm0, %v456_v18, -inf  ;;  %v432_v22 = vsel %vm431_vm1, %v430_v19, -1e+30  ;;  %v626_v25 = vsel %vm431_vm1, %v625_v23, -1e+30  ;;  %1957 = vmatpush1.bf16.msra.mxu1 %v1956_v58 }
 0x26b   :  { %726 = vmax.xlane.f32.xlu1 %v725_v20  ;;  %458 = vmax.xlane.f32.xlu0 %v457_v21  ;;  %v433_v24 = vsel %vm36_vm0, %v432_v22, -inf  ;;  %v627_v26 = vsel %vm36_vm0, %v626_v25, -inf  ;;  %v1960_v5 = vpack.c.bf16 %v836_v3, %v832_v2  ;;  %v1962_v9 = vpack.c.bf16 %v845_v8, %v841_v7  ;;  %v840_v10 = vld [vmem:[%s2965_s5 + $0x80] sm:$0xff]  ;;  %v857_v58 = vld [vmem:[%s2965_s5 + $0x108] sm:$0xff]  ;;  %v863_v2 = vld [vmem:[%s2965_s5 + $0x138] sm:$0xff] }
 0x26c   :  { %1959 = vmatprep.subr.bf16.mxu1 %v1958_v1  ;;  %v844_v11 = vld [vmem:[%s2965_s5 + $0xa0] sm:$0xff]  ;;  %v2000_v57 = vpack.c.bf16 %v854_v55, %v850_v54  ;;  %v1970_v1 = vpack.c.bf16 %v861_v63, %v857_v58  ;;  %v2002_v7 = vpack.c.bf16 %v863_v2, %v859_v0  ;;  %v1079_v54 = vld [vmem:[%s2966_s6 + $0x188] sm:$0xff] }
 0x26d   :  { %v1964_v12 = vpack.c.bf16 %v844_v11, %v840_v10  ;;  %v856_v3 = vld [vmem:[%s2965_s5 + $0x100] sm:$0xff]  ;;  %v862_v10 = vld [vmem:[%s2965_s5 + $0x130] sm:$0xff] }
 0x26e   :  { %1961 = vmatpush1.bf16.msra.mxu1 %v1960_v5  ;;  %v860_v5 = vld [vmem:[%s2965_s5 + $0x120] sm:$0xff] }
 0x26f   :  { %434 = vmax.xlane.f32.xlu0 %v433_v24  ;;  %1963 = vmatprep.subr.bf16.mxu1 %v1962_v9  ;;  %v1972_v8 = vpack.c.bf16 %v860_v5, %v856_v3  ;;  %v858_v9 = vld [vmem:[%s2965_s5 + $0x110] sm:$0xff]  ;;  %v1687_v58 = vld [vmem:[%s2964_s4] ss:$0 sm:$0xff]  ;;  %v1031_v5 = vld [vmem:[%s2966_s6 + $0x8] sm:$0xff] }
 0x270   :  { %v2004_v11 = vpack.c.bf16 %v862_v10, %v858_v9  ;;  %v1030_v3 = vld [vmem:[%s2966_s6] sm:$0xff]  ;;  %v1048_v9 = vld [vmem:[%s2966_s6 + $0x90] sm:$0xff]  ;;  %v1049_v10 = vld [vmem:[%s2966_s6 + $0x98] sm:$0xff] }
 0x272   :  { %1965 = vmatpush1.bf16.msra.mxu1 %v1964_v12  ;;  %v865_v12 = vld [vmem:[%s2965_s5 + $0x148] sm:$0xff] }
 0x273   :  { %628 = vmax.xlane.f32.xlu0 %v627_v26 }
 0x2f8   :  { %v459_v27 = vpop.xlane.xlu0 %458  ;;  %v727_v31 = vpop.xlane.xlu1 %726 }
 0x2f9   :  { %v460_v28 = vsub.f32 %v456_v18, %v459_v27  ;;  %v728_v34 = vsub.f32 %v724_v17, %v727_v31  ;;  %v835_v27 = vld [vmem:[%s2965_s5 + $0x58] sm:$0xff]  ;;  %v834_v31 = vld [vmem:[%s2965_s5 + $0x50] sm:$0xff] }
 0x2fb   :  { %v461_v29 = vmul.f32 1.442695, %v460_v28  ;;  %v729_v38 = vmul.f32 1.442695, %v728_v34  ;;  %v847_v34 = vld [vmem:[%s2965_s5 + $0xb8] sm:$0xff] }
 0x2fc   :  { %v435_v30 = vpop.xlane.xlu0 %434 }
 0x2fd   :  { %v436_v32 = vsub.f32 %v432_v22, %v435_v30  ;;  %2110 = vpow2.f32 %v461_v29  ;;  %v831_v22 = vld [vmem:[%s2965_s5 + $0x38] sm:$0xff] }
 0x2ff   :  { %v437_v33 = vmul.f32 1.442695, %v436_v32  ;;  %v838_v32 = vld [vmem:[%s2965_s5 + $0x70] sm:$0xff] }
 0x300   :  { %v629_v35 = vpop.xlane.xlu0 %628 }
 0x301   :  { %2112 = vpow2.f32 %v437_v33  ;;  %v630_v36 = vsub.f32 %v626_v25, %v629_v35  ;;  %v830_v25 = vld [vmem:[%s2965_s5 + $0x30] sm:$0xff]  ;;  %v843_v33 = vld [vmem:[%s2965_s5 + $0x98] sm:$0xff]  ;;  %v1992_v35 = vpack.c.bf16 %v838_v32, %v834_v31  ;;  %v881_v32 = vld [vmem:[%s2965_s5 + $0x1c8] sm:$0xff] }
 0x302   :  { %v878_v31 = vld [vmem:[%s2965_s5 + $0x1b0] sm:$0xff] }
 0x303   :  { %v631_v37 = vmul.f32 1.442695, %v630_v36  ;;  %v1994_v36 = vpack.c.bf16 %v847_v34, %v843_v33  ;;  %v885_v33 = vld [vmem:[%s2965_s5 + $0x1e8] sm:$0xff] }
 0x305   :  { %2114 = vpow2.f32 %v631_v37  ;;  %v842_v37 = vld [vmem:[%s2965_s5 + $0x90] sm:$0xff] }
 0x306   :  { %2116 = vpow2.f32 %v729_v38  ;;  %v846_v38 = vld [vmem:[%s2965_s5 + $0xb0] sm:$0xff] }
 0x307   :  { %v2111_v41 = vpop.eup %2110 }
 0x308   :  { %v463_v44 = vsel %vm36_vm0, %v2111_v41, 0.0 }
 0x309   :  { %464 = vadd.xlane.f32.xlu0 %v463_v44  ;;  %v849_v44 = vld [vmem:[%s2965_s5 + $0xc8] sm:$0xff] }
 0x30b   :  { %v2113_v45 = vpop.eup %2112 }
 0x30c   :  { %v439_v46 = vsel %vm36_vm0, %v2113_v45, 0.0 }
 0x30d   :  { %440 = vadd.xlane.f32.xlu0 %v439_v46  ;;  %v851_v46 = vld [vmem:[%s2965_s5 + $0xd8] sm:$0xff] }
 0x30f   :  { %v2115_v47 = vpop.eup %2114 }
 0x310   :  { %v633_v48 = vsel %vm36_vm0, %v2115_v47, 0.0  ;;  %v2480_v49 = vpop.eup %2116 }
 0x311   :  { %634 = vadd.xlane.f32.xlu0 %v633_v48  ;;  %v731_v50 = vsel %vm36_vm0, %v2480_v49, 0.0  ;;  %v855_v48 = vld [vmem:[%s2965_s5 + $0xf8] sm:$0xff] }
 0x312   :  { %v1998_v51 = vpack.c.bf16 %v855_v48, %v851_v46  ;;  %v886_v46 = vld [vmem:[%s2965_s5 + $0x1f0] sm:$0xff] }
 0x315   :  { %732 = vadd.xlane.f32.xlu0 %v731_v50  ;;  %v852_v50 = vld [vmem:[%s2965_s5 + $0xe0] sm:$0xff] }
 0x396   :  { %v465_v13 = vpop.xlane.xlu0 %464 }
 0x397   :  { %2118 = vrcp.f32 %v465_v13  ;;  %v869_v13 = vld [vmem:[%s2965_s5 + $0x168] sm:$0xff] }
 0x39a   :  { %v441_v14 = vpop.xlane.xlu0 %440 }
 0x39b   :  { %2120 = vrcp.f32 %v441_v14  ;;  %v867_v14 = vld [vmem:[%s2965_s5 + $0x158] sm:$0xff] }
 0x39e   :  { %v635_v17 = vpop.xlane.xlu0 %634 }
 0x39f   :  { %2122 = vrcp.f32 %v635_v17  ;;  %v864_v17 = vld [vmem:[%s2965_s5 + $0x140] sm:$0xff] }
 0x3a1   :  { %v2119_v15 = vpop.eup %2118 }
 0x3a2   :  { %v467_v16 = vmul.f32 %v2119_v15, %v2111_v41  ;;  %v733_v20 = vpop.xlane.xlu0 %732  ;;  %v1996_v41 = vpack.c.bf16 %v846_v38, %v842_v37  ;;  %v1974_v15 = vpack.c.bf16 %v869_v13, %v865_v12  ;;  %v887_v37 = vld [vmem:[%s2965_s5 + $0x1f8] sm:$0xff]  ;;  %v880_v38 = vld [vmem:[%s2965_s5 + $0x1c0] sm:$0xff] }
 0x3a3   :  { %2124 = vrcp.f32 %v733_v20  ;;  %v1081_v12 = vld [vmem:[%s2966_s6 + $0x198] sm:$0xff] }
 0x3a4   :  { %1853 = vmatmul.mubr.msk.f32.vlgmr.msra.gmra.mrb[4].mxu0 %vm36_vm0, %v467_v16  ;;  %v871_v16 = vld [vmem:[%s2965_s5 + $0x178] sm:$0xff] }
 0x3a5   :  { %1856 = vmatpush3.msra.mxu0 %v2432_v39  ;;  %1857 = vmatprep.mubr.msk.f32.mxu0 %vm2173_vm6, %v2168_v6  ;;  %v2121_v18 = vpop.eup %2120  ;;  %v827_v39 = vld [vmem:[%s2965_s5 + $0x18] sm:$0xff] }
 0x3a6   :  { %1860 = vmatprep.subr.mxu0 %v2168_v6  ;;  %v443_v19 = vmul.f32 %v2121_v18, %v2113_v45  ;;  %v1986_v24 = vpack.c.bf16 %v831_v22, %v827_v39  ;;  %v853_v45 = vld [vmem:[%s2965_s5 + $0xe8] sm:$0xff]  ;;  %v868_v18 = vld [vmem:[%s2965_s5 + $0x160] sm:$0xff]  ;;  %v870_v39 = vld [vmem:[%s2965_s5 + $0x170] sm:$0xff] }
 0x3a7   :  { %v1976_v20 = vpack.c.bf16 %v868_v18, %v864_v17  ;;  %v873_v22 = vld [vmem:[%s2965_s5 + $0x188] sm:$0xff]  ;;  %v1032_v17 = vld [vmem:[%s2966_s6 + $0x10] sm:$0xff]  ;;  %v1033_v18 = vld [vmem:[%s2966_s6 + $0x18] sm:$0xff] }
 0x3a9   :  { %v2123_v21 = vpop.eup %2122 }
 0x3aa   :  { %v637_v23 = vmul.f32 %v2123_v21, %v2115_v47  ;;  %v1966_v47 = vpack.c.bf16 %v853_v45, %v849_v44  ;;  %v866_v21 = vld [vmem:[%s2965_s5 + $0x150] sm:$0xff]  ;;  %v884_v44 = vld [vmem:[%s2965_s5 + $0x1e0] sm:$0xff] }
 0x3ab   :  { %v882_v45 = vld [vmem:[%s2965_s5 + $0x1d0] sm:$0xff] }
 0x3ac   :  { %1858 = vmatmul.mubr.msk.f32.vlgmr.msra.gmra.mrb[4].mxu0 %vm36_vm0, %v443_v19  ;;  %1967 = vmatprep.subr.bf16.mxu1 %v1966_v47  ;;  %v2006_v19 = vpack.c.bf16 %v871_v16, %v867_v14  ;;  %v1984_v47 = vpack.c.bf16 %v884_v44, %v880_v38  ;;  %v2016_v48 = vpack.c.bf16 %v886_v46, %v882_v45  ;;  %v1037_v44 = vld [vmem:[%s2966_s6 + $0x38] sm:$0xff] }
 0x3ad   :  { %1861 = vmatpush3.msra.mxu0 %v2434_v40  ;;  %1862 = vmatprep.mubr.msk.f32.mxu0 %vm2173_vm6, %v2168_v6  ;;  %v826_v40 = vld [vmem:[%s2965_s5 + $0x10] sm:$0xff]  ;;  %v2125_v26 = vpop.eup %2124 }
 0x3ae   :  { %1865 = vmatprep.subr.mxu0 %v2168_v6  ;;  %v1988_v28 = vpack.c.bf16 %v830_v25, %v826_v40  ;;  %v735_v29 = vmul.f32 %v2125_v26, %v2480_v49  ;;  %v848_v49 = vld [vmem:[%s2965_s5 + $0xc0] sm:$0xff]  ;;  %v875_v40 = vld [vmem:[%s2965_s5 + $0x198] sm:$0xff] }
 0x3af   :  { %v1968_v53 = vpack.c.bf16 %v852_v50, %v848_v49  ;;  %v879_v25 = vld [vmem:[%s2965_s5 + $0x1b8] sm:$0xff]  ;;  %v1046_v49 = vld [vmem:[%s2966_s6 + $0x80] sm:$0xff]  ;;  %v1047_v50 = vld [vmem:[%s2966_s6 + $0x88] sm:$0xff] }
 0x3b1   :  { %1969 = vmatpush1.bf16.msra.mxu1 %v1968_v53  ;;  %v1078_v53 = vld [vmem:[%s2966_s6 + $0x180] sm:$0xff] }
 0x3b2   :  { %1971 = vmatprep.subr.bf16.mxu1 %v1970_v1  ;;  %v2050_v55 = vpack.c.bf16 %v1079_v54, %v1078_v53  ;;  %v1087_v53 = vld [vmem:[%s2966_s6 + $0x1c8] sm:$0xff] }
 0x3b4   :  { %1863 = vmatmul.mubr.msk.f32.vlgmr.msra.gmra.mrb[4].mxu0 %vm36_vm0, %v637_v23  ;;  %v2008_v23 = vpack.c.bf16 %v870_v39, %v866_v21  ;;  %v1064_v21 = vld [vmem:[%s2966_s6 + $0x110] sm:$0xff]  ;;  %v1065_v39 = vld [vmem:[%s2966_s6 + $0x118] sm:$0xff] }
 0x3b5   :  { %1866 = vmatpush3.msra.mxu0 %v2436_v42  ;;  %1867 = vmatprep.mubr.msk.f32.mxu0 %vm2173_vm6, %v2168_v6  ;;  %v839_v42 = vld [vmem:[%s2965_s5 + $0x78] sm:$0xff] }
 0x3b6   :  { %1987 = vmatprep.subr.bf16.mxu0 %v1986_v24  ;;  %v1990_v30 = vpack.c.bf16 %v839_v42, %v835_v27  ;;  %1973 = vmatpush1.bf16.msra.mxu1 %v1972_v8  ;;  %v877_v24 = vld [vmem:[%s2965_s5 + $0x1a8] sm:$0xff]  ;;  %v2010_v27 = vpack.c.bf16 %v879_v25, %v875_v40  ;;  %v872_v42 = vld [vmem:[%s2965_s5 + $0x180] sm:$0xff] }
 0x3b7   :  { %1975 = vmatprep.subr.bf16.mxu1 %v1974_v15  ;;  %v1978_v26 = vpack.c.bf16 %v877_v24, %v873_v22  ;;  %v1063_v8 = vld [vmem:[%s2966_s6 + $0x108] sm:$0xff]  ;;  %v2020_v15 = vpack.c.bf16 %v1031_v5, %v1030_v3  ;;  %v1050_v22 = vld [vmem:[%s2966_s6 + $0xa0] sm:$0xff]  ;;  %v1056_v3 = vld [vmem:[%s2966_s6 + $0xd0] sm:$0xff] }
 0x3b8   :  { %v1051_v24 = vld [vmem:[%s2966_s6 + $0xa8] sm:$0xff]  ;;  %v1082_v40 = vld [vmem:[%s2966_s6 + $0x1a0] sm:$0xff]  ;;  %v1057_v5 = vld [vmem:[%s2966_s6 + $0xd8] sm:$0xff] }
 0x3b9   :  { %v1083_v25 = vld [vmem:[%s2966_s6 + $0x1a8] sm:$0xff] }
 0x3ba   :  { %1977 = vmatpush1.bf16.msra.mxu1 %v1976_v20 }
 0x3bb   :  { %1979 = vmatprep.subr.bf16.mxu1 %v1978_v26  ;;  %v2024_v26 = vpack.c.bf16 %v1033_v18, %v1032_v17  ;;  %v1058_v17 = vld [vmem:[%s2966_s6 + $0xe0] sm:$0xff]  ;;  %v1059_v18 = vld [vmem:[%s2966_s6 + $0xe8] sm:$0xff] }
 0x3bc   :  { %1868 = vmatmul.mubr.msk.f32.vlgmr.msra.gmra.mrb[4].mxu0 %vm36_vm0, %v735_v29  ;;  %v874_v29 = vld [vmem:[%s2965_s5 + $0x190] sm:$0xff] }
 0x3bd   :  { %1989 = vmatpush1.bf16.msra.mxu0 %v1988_v28  ;;  %1023 = vmatprep.mubr.f32.mxu0 %v2168_v6  ;;  %v876_v28 = vld [vmem:[%s2965_s5 + $0x1a0] sm:$0xff]  ;;  %v2012_v34 = vpack.c.bf16 %v878_v31, %v874_v29  ;;  %v2026_v29 = vpack.c.bf16 %v1051_v24, %v1050_v22  ;;  %v2042_v24 = vpack.c.bf16 %v1059_v18, %v1058_v17 }
 0x3be   :  { %1991 = vmatprep.subr.bf16.mxu0 %v1990_v30  ;;  %v1980_v30 = vpack.c.bf16 %v876_v28, %v872_v42  ;;  %v1034_v42 = vld [vmem:[%s2966_s6 + $0x20] sm:$0xff]  ;;  %v1035_v28 = vld [vmem:[%s2966_s6 + $0x28] sm:$0xff] }
 0x3bf   :  { %v1066_v31 = vld [vmem:[%s2966_s6 + $0x120] sm:$0xff] }
 0x3c0   :  { %1981 = vmatpush1.bf16.msra.mxu1 %v1980_v30  ;;  %v2058_v30 = vpack.c.bf16 %v1083_v25, %v1082_v40  ;;  %v1042_v22 = vld [vmem:[%s2966_s6 + $0x60] sm:$0xff] }
 0x3c1   :  { %1993 = vmatpush1.bf16.msra.mxu0 %v1992_v35  ;;  %v1982_v35 = vpack.c.bf16 %v885_v33, %v881_v32  ;;  %v1067_v32 = vld [vmem:[%s2966_s6 + $0x128] sm:$0xff]  ;;  %v1052_v33 = vld [vmem:[%s2966_s6 + $0xb0] sm:$0xff]  ;;  %v1074_v25 = vld [vmem:[%s2966_s6 + $0x160] sm:$0xff] }
 0x3c2   :  { %1995 = vmatprep.subr.bf16.mxu0 %v1994_v36  ;;  %v883_v36 = vld [vmem:[%s2965_s5 + $0x1d8] sm:$0xff]  ;;  %v2060_v38 = vpack.c.bf16 %v1067_v32, %v1066_v31 }
 0x3c3   :  { %1983 = vmatprep.subr.bf16.mxu1 %v1982_v35  ;;  %v1084_v35 = vld [vmem:[%s2966_s6 + $0x1b0] sm:$0xff] }
 0x3c4   :  { %1985 = vmatpush1.bf16.msra.mxu1 %v1984_v47  ;;  %v1068_v47 = vld [vmem:[%s2966_s6 + $0x130] sm:$0xff] }
 0x3c5   :  { %1997 = vmatpush1.bf16.msra.mxu0 %v1996_v41  ;;  %v2014_v41 = vpack.c.bf16 %v887_v37, %v883_v36  ;;  %v1085_v36 = vld [vmem:[%s2966_s6 + $0x1b8] sm:$0xff]  ;;  %v2028_v37 = vpack.c.bf16 %v1035_v28, %v1034_v42  ;;  %v1092_v28 = vld [vmem:[%s2966_s6 + $0x1f0] sm:$0xff] }
 0x3c6   :  { %1999 = vmatprep.subr.bf16.mxu0 %v1998_v51  ;;  %v2018_v51 = vpack.c.bf16 %v1047_v50, %v1046_v49  ;;  %v2062_v46 = vpack.c.bf16 %v1085_v36, %v1084_v35  ;;  %v1054_v49 = vld [vmem:[%s2966_s6 + $0xc0] sm:$0xff]  ;;  %v1055_v50 = vld [vmem:[%s2966_s6 + $0xc8] sm:$0xff]  ;;  %v1061_v42 = vld [vmem:[%s2966_s6 + $0xf8] sm:$0xff] }
 0x3c8   :  { %2019 = vmatprep.subr.bf16.mxu1 %v2018_v51  ;;  %v1086_v51 = vld [vmem:[%s2966_s6 + $0x1c0] sm:$0xff] }
 0x3c9   :  { %2001 = vmatpush1.bf16.msra.mxu0 %v2000_v57 }
 0x3ca   :  { %2003 = vmatprep.subr.bf16.mxu0 %v2002_v7  ;;  %v1062_v7 = vld [vmem:[%s2966_s6 + $0x100] sm:$0xff] }
 0x3cb   :  { %v2052_v16 = vpack.c.bf16 %v1063_v8, %v1062_v7  ;;  %v1088_v7 = vld [vmem:[%s2966_s6 + $0x1d0] sm:$0xff]  ;;  %v1089_v8 = vld [vmem:[%s2966_s6 + $0x1d8] sm:$0xff] }
 0x3cd   :  { %2005 = vmatpush1.bf16.msra.mxu0 %v2004_v11  ;;  %v1080_v11 = vld [vmem:[%s2966_s6 + $0x190] sm:$0xff] }
 0x3ce   :  { %2007 = vmatprep.subr.bf16.mxu0 %v2006_v19  ;;  %v2022_v19 = vpack.c.bf16 %v1049_v10, %v1048_v9  ;;  %v2054_v20 = vpack.c.bf16 %v1081_v12, %v1080_v11  ;;  %v1040_v11 = vld [vmem:[%s2966_s6 + $0x50] sm:$0xff]  ;;  %v1041_v12 = vld [vmem:[%s2966_s6 + $0x58] sm:$0xff] }
 0x3d1   :  { %2009 = vmatpush1.bf16.msra.mxu0 %v2008_v23 }
 0x3d2   :  { %2011 = vmatprep.subr.bf16.mxu0 %v2010_v27  ;;  %v2056_v27 = vpack.c.bf16 %v1065_v39, %v1064_v21  ;;  %v2040_v21 = vpack.c.bf16 %v1041_v12, %v1040_v11 }
 0x3d5   :  { %2013 = vmatpush1.bf16.msra.mxu0 %v2012_v34  ;;  %v1053_v34 = vld [vmem:[%s2966_s6 + $0xb8] sm:$0xff] }
 0x3d6   :  { %2015 = vmatprep.subr.bf16.mxu0 %v2014_v41  ;;  %v1036_v41 = vld [vmem:[%s2966_s6 + $0x30] sm:$0xff]  ;;  %v2030_v45 = vpack.c.bf16 %v1053_v34, %v1052_v33  ;;  %v1045_v34 = vld [vmem:[%s2966_s6 + $0x78] sm:$0xff] }
 0x3d7   :  { %v2032_v54 = vpack.c.bf16 %v1037_v44, %v1036_v41  ;;  %v1044_v33 = vld [vmem:[%s2966_s6 + $0x70] sm:$0xff] }
 0x3d8   :  { %v2048_v36 = vpack.c.bf16 %v1045_v34, %v1044_v33 }
 0x3d9   :  { %2017 = vmatpush1.bf16.msra.mxu0 %v2016_v48  ;;  %v1069_v48 = vld [vmem:[%s2966_s6 + $0x138] sm:$0xff] }
 0x3da   :  { %2051 = vmatprep.subr.bf16.mxu0 %v2050_v55  ;;  %v2064_v55 = vpack.c.bf16 %v1069_v48, %v1068_v47 }
 0x48f   :  { %v805_v57 = vpop.f32.mrb[4].mxu0 }
 0x490   :  { %v810_v63 = vmul.f32 0.25, %v805_v57  ;;  %v1869_v0 = vpop.f32.mrb[5].mxu0  ;;  %v1038_v57 = vld [vmem:[%s2966_s6 + $0x40] sm:$0xff] }
 0x491   :  { %v2066_v0 = vpack.c.bf16 %v1087_v53, %v1086_v51 }
 0x492   :  { %v818_v1 = vadd.f32 %v1687_v58, %v810_v63  ;;  %v1039_v58 = vld [vmem:[%s2966_s6 + $0x48] sm:$0xff]  ;;  %v2034_v63 = vpack.c.bf16 %v1055_v50, %v1054_v49 }
 0x493   :  { %v2036_v9 = vpack.c.bf16 %v1039_v58, %v1038_v57 }
 0x494   :  { %v820_v2 = vmul.f32 1.442695, %v818_v1  ;;  %vm819_vm7 = vcmp.gt.f32.partialorder %v818_v1, 0.0 }
 0x496   :  { %2126 = vpow2.f32 %v820_v2  ;;  %v1071_v2 = vld [vmem:[%s2966_s6 + $0x148] sm:$0xff] }
 0x4a0   :  { %v2127_v13 = vpop.eup %2126 }
 0x4a1   :  { %v1688_v14 = vadd.f32 -1.0, %v2127_v13  ;;  %v2038_v13 = vpack.c.bf16 %v1057_v5, %v1056_v3 }
 0x4a3   :  { %v823_v23 = vsel %vm819_vm7, %v818_v1, %v1688_v14  ;;  %v1070_v1 = vld [vmem:[%s2966_s6 + $0x140] sm:$0xff]  ;;  %v2070_v14 = vpack.c.bf16 %v1089_v8, %v1088_v7 }
 0x4a4   :  { %953 = vmatmul.mubr.f32.vlgmr.msra.gmra.mrb[4].mxu1 %v823_v23  ;;  %1024 = vmatmul.mubr.f32.vlgmr.msra.gmra.mrb[6].mxu0 %v823_v23  ;;  %v2068_v10 = vpack.c.bf16 %v1071_v2, %v1070_v1  ;;  %v1043_v23 = vld [vmem:[%s2966_s6 + $0x68] sm:$0xff] }
 0x4a5   :  { %2021 = vmatpush3.bf16.msra.mxu1 %v2020_v15  ;;  %2053 = vmatpush3.bf16.msra.mxu0 %v2052_v16  ;;  %v1072_v15 = vld [vmem:[%s2966_s6 + $0x150] sm:$0xff]  ;;  %v1073_v16 = vld [vmem:[%s2966_s6 + $0x158] sm:$0xff] }
 0x4a6   :  { %2023 = vmatprep.subr.bf16.mxu1 %v2022_v19  ;;  %2055 = vmatprep.subr.bf16.mxu0 %v2054_v20  ;;  %v1090_v19 = vld [vmem:[%s2966_s6 + $0x1e0] sm:$0xff]  ;;  %v1091_v20 = vld [vmem:[%s2966_s6 + $0x1e8] sm:$0xff]  ;;  %v2072_v39 = vpack.c.bf16 %v1073_v16, %v1072_v15 }
 0x4a7   :  { %v2074_v40 = vpack.c.bf16 %v1091_v20, %v1090_v19 }
 0x4a9   :  { %2025 = vmatpush3.bf16.msra.mxu1 %v2024_v26  ;;  %2057 = vmatpush3.bf16.msra.mxu0 %v2056_v27  ;;  %v1075_v26 = vld [vmem:[%s2966_s6 + $0x168] sm:$0xff]  ;;  %v1060_v27 = vld [vmem:[%s2966_s6 + $0xf0] sm:$0xff] }
 0x4aa   :  { %2027 = vmatprep.subr.bf16.mxu1 %v2026_v29  ;;  %2059 = vmatprep.subr.bf16.mxu0 %v2058_v30  ;;  %v1093_v29 = vld [vmem:[%s2966_s6 + $0x1f8] sm:$0xff]  ;;  %v2044_v30 = vpack.c.bf16 %v1043_v23, %v1042_v22  ;;  %v2076_v31 = vpack.c.bf16 %v1075_v26, %v1074_v25  ;;  %v2046_v32 = vpack.c.bf16 %v1061_v42, %v1060_v27 }
 0x4ab   :  { %v2078_v35 = vpack.c.bf16 %v1093_v29, %v1092_v28 }
 0x4ad   :  { %2029 = vmatpush3.bf16.msra.mxu1 %v2028_v37  ;;  %2061 = vmatpush3.bf16.msra.mxu0 %v2060_v38  ;;  %v1076_v37 = vld [vmem:[%s2966_s6 + $0x170] sm:$0xff]  ;;  %v1077_v38 = vld [vmem:[%s2966_s6 + $0x178] sm:$0xff] }
 0x4ae   :  { %2031 = vmatprep.subr.bf16.mxu1 %v2030_v45  ;;  %2063 = vmatprep.subr.bf16.mxu0 %v2062_v46  ;;  %v2080_v41 = vpack.c.bf16 %v1077_v38, %v1076_v37 }
 0x4b1   :  { %2033 = vmatpush3.bf16.msra.mxu1 %v2032_v54  ;;  %2065 = vmatpush3.bf16.msra.mxu0 %v2064_v55 }
 0x4b2   :  { %2035 = vmatprep.subr.bf16.mxu1 %v2034_v63  ;;  %2067 = vmatprep.subr.bf16.mxu0 %v2066_v0 }
 0x4b5   :  { %2037 = vmatpush3.bf16.msra.mxu1 %v2036_v9  ;;  %2069 = vmatpush3.bf16.msra.mxu0 %v2068_v10 }
 0x4b6   :  { %2039 = vmatprep.subr.bf16.mxu1 %v2038_v13  ;;  %2071 = vmatprep.subr.bf16.mxu0 %v2070_v14 }
 0x4b9   :  { %2041 = vmatpush3.bf16.msra.mxu1 %v2040_v21  ;;  %2073 = vmatpush3.bf16.msra.mxu0 %v2072_v39 }
 0x4ba   :  { %2043 = vmatprep.subr.bf16.mxu1 %v2042_v24  ;;  %2075 = vmatprep.subr.bf16.mxu0 %v2074_v40 }
 0x4bd   :  { %2045 = vmatpush3.bf16.msra.mxu1 %v2044_v30  ;;  %2077 = vmatpush3.bf16.msra.mxu0 %v2076_v31 }
 0x4be   :  { %2047 = vmatprep.subr.bf16.mxu1 %v2046_v32  ;;  %2079 = vmatprep.subr.bf16.mxu0 %v2078_v35 }
 0x4c1   :  { %2049 = vmatpush3.bf16.msra.mxu1 %v2048_v36  ;;  %2081 = vmatpush3.bf16.msra.mxu0 %v2080_v41 }
 0x4c2   :  { %1870 = vmatprep.subr.mxu1 %v2168_v6 }
 0x577   :  { %v2891_v44 = vpop.f32.mrb[4].mxu1  ;;  %v2893_v45 = vpop.f32.mrb[6].mxu0 }
 0x578   :  { %v956_v46 = vpop.f32.mrb[5].mxu1  ;;  %v2895_v47 = vpop.f32.mrb[7].mxu0 }
 0x579   :  { %1158 = vmatprep.mubr.f32.mxu1 %v956_v46  ;;  %1228 = vmatprep.mubr.f32.mxu0 %v2895_v47 }
 0x57a   :  { %1159 = vmatmul.mubr.f32.vlgmr.msra.gmra.mrb[6].mxu1 %v2891_v44  ;;  %1229 = vmatmul.mubr.f32.vlgmr.msra.gmra.mrb[8].mxu0 %v2893_v45 }
 0x57b   :  { %1871 = vmatpush3.msra.mxu1 %v956_v46  ;;  %1872 = vmatprep.mubr.msk.f32.mxu1 %vm2173_vm6, %v2168_v6 }
 0x57c   :  { %1875 = vmatprep.subr.mxu1 %v2168_v6 }
 0x64d   :  { %v1804_v48 = vpop.f32.mrb[6].mxu1  ;;  %v1839_v49 = vpop.f32.mrb[8].mxu0 }
 0x64e   :  { %v1805_v50 = vpop.f32.mrb[7].mxu1  ;;  %v1840_v51 = vpop.f32.mrb[9].mxu0 }
 0x64f   :  { %v1806_v53 = vadd.f32 %v1805_v50, %v1804_v48  ;;  %v1841_v54 = vadd.f32 %v1840_v51, %v1839_v49 }
 0x651   :  { %v1231_v55 = vadd.f32 %v1841_v54, %v1806_v53 }
 0x653   :  { %1268 = vperm.xlu1 %2106, %v1231_v55   ;;  %1292 = vperm.xlu0 %2105, %v1231_v55  }
 0x657   :  { %2107 = vset.pattern.permute.xlu1 %v2169_v43 }
 0x658   :  { %1462 = vperm.xlu1 %2107, %v1231_v55  }
 0x65c   :  { %2108 = vset.pattern.permute.xlu1 %v2171_v52 }
 0x65d   :  { %1560 = vperm.xlu1 %2108, %v1231_v55  }
 0x671   :  { %1234 = vxpose.xlu0.b32.start.end [1/1] (short) (narrow) %v1231_v55, 8 }
 0x69a   :  { %2109 = vset.pattern.permute.xlu0 %v2171_v52 }
 0x6d2   :  { %v1269_v57 = vpop.permute.xlu1 %1268  ;;  %v1293_v58 = vpop.permute.xlu0 %1292 }
 0x6d7   :  { %v1463_v63 = vpop.permute.xlu1 %1462 }
 0x6dc   :  { %v1561_v5 = vpop.permute.xlu1 %1560 }
 0x6f1   :  { %v1250_v0 = vpop.trf.xlu0 }
 0x6f2   :  { %v1274_v1 = vrot.slane %v1250_v0, %v425_v59  ;;  %v1298_v2 = vrot.slane %v1250_v0, %v450_v60  ;;  %v1468_v43 = vrot.slane %v1250_v0, %v620_v61  ;;  %v1566_v3 = vrot.slane %v1250_v0, %v718_v62 }
 0x6f4   :  { %v1299_v7 = vadd.f32 %v1298_v2, %v1293_v58  ;;  %v1275_v8 = vadd.f32 %v1274_v1, %v1269_v57  ;;  %v1469_v52 = vadd.f32 %v1468_v43, %v1463_v63  ;;  %v1567_v9 = vadd.f32 %v1566_v3, %v1561_v5 }
 0x6f6   :  { %vm1300_vm8 = vcmp.gt.f32.partialorder %v1299_v7, 0.0  ;;  %v1301_v10 = vmul.f32 0.2, %v1299_v7  ;;  %vm1276_vm9 = vcmp.gt.f32.partialorder %v1275_v8, 0.0  ;;  %v1277_v11 = vmul.f32 0.2, %v1275_v8 }
 0x6f7   :  { %vm1470_vm10 = vcmp.gt.f32.partialorder %v1469_v52, 0.0  ;;  %v1471_v59 = vmul.f32 0.2, %v1469_v52  ;;  %v1569_v60 = vmul.f32 0.2, %v1567_v9  ;;  %vm1568_vm11 = vcmp.gt.f32.partialorder %v1567_v9, 0.0 }
 0x6f8   :  { %v1302_v12 = vsel %vm1300_vm8, %v1299_v7, %v1301_v10  ;;  %v1278_v13 = vsel %vm1276_vm9, %v1275_v8, %v1277_v11 }
 0x6f9   :  { %v1303_v61 = vsel %vm431_vm1, %v1302_v12, -1e+30  ;;  %v1279_v56 = vsel %vm431_vm1, %v1278_v13, -1e+30  ;;  %v1472_v62 = vsel %vm1470_vm10, %v1469_v52, %v1471_v59  ;;  %v1570_v17 = vsel %vm1568_vm11, %v1567_v9, %v1569_v60 }
 0x6fa   :  { %v1304_v14 = vsel %vm36_vm0, %v1303_v61, -inf  ;;  %v1280_v15 = vsel %vm36_vm0, %v1279_v56, -inf  ;;  %v1473_v16 = vsel %vm431_vm1, %v1472_v62, -1e+30  ;;  %v1571_v19 = vsel %vm431_vm1, %v1570_v17, -1e+30 }
 0x6fb   :  { %1305 = vmax.xlane.f32.xlu1 %v1304_v14  ;;  %1281 = vmax.xlane.f32.xlu0 %v1280_v15  ;;  %v1474_v18 = vsel %vm36_vm0, %v1473_v16, -inf  ;;  %v1572_v20 = vsel %vm36_vm0, %v1571_v19, -inf }
 0x6ff   :  { %1475 = vmax.xlane.f32.xlu1 %v1474_v18 }
 0x703   :  { %1573 = vmax.xlane.f32.xlu1 %v1572_v20 }
 0x788   :  { %v1306_v21 = vpop.xlane.xlu1 %1305  ;;  %v1282_v39 = vpop.xlane.xlu0 %1281 }
 0x789   :  { %v1307_v22 = vsub.f32 %v1303_v61, %v1306_v21  ;;  %v1283_v23 = vsub.f32 %v1279_v56, %v1282_v39 }
 0x78b   :  { %v1308_v24 = vmul.f32 1.442695, %v1307_v22  ;;  %v1284_v40 = vmul.f32 1.442695, %v1283_v23 }
 0x78c   :  { %v1476_v25 = vpop.xlane.xlu1 %1475 }
 0x78d   :  { %2128 = vpow2.f32 %v1308_v24  ;;  %v1477_v26 = vsub.f32 %v1473_v16, %v1476_v25 }
 0x78e   :  { %2130 = vpow2.f32 %v1284_v40 }
 0x78f   :  { %v1478_v27 = vmul.f32 1.442695, %v1477_v26 }
 0x790   :  { %v1574_v42 = vpop.xlane.xlu1 %1573 }
 0x791   :  { %v1575_v28 = vsub.f32 %v1571_v19, %v1574_v42  ;;  %2132 = vpow2.f32 %v1478_v27 }
 0x793   :  { %v1576_v29 = vmul.f32 1.442695, %v1575_v28 }
 0x795   :  { %2134 = vpow2.f32 %v1576_v29 }
 0x797   :  { %v2129_v4 = vpop.eup %2128 }
 0x798   :  { %v1310_v30 = vsel %vm36_vm0, %v2129_v4, 0.0  ;;  %v2131_v31 = vpop.eup %2130 }
 0x799   :  { %1311 = vadd.xlane.f32.xlu1 %v1310_v30  ;;  %v1286_v32 = vsel %vm36_vm0, %v2131_v31, 0.0 }
 0x79b   :  { %v2133_v33 = vpop.eup %2132 }
 0x79c   :  { %v1480_v34 = vsel %vm36_vm0, %v2133_v33, 0.0 }
 0x79d   :  { %1287 = vadd.xlane.f32.xlu1 %v1286_v32 }
 0x79f   :  { %v2135_v35 = vpop.eup %2134 }
 0x7a0   :  { %v1578_v36 = vsel %vm36_vm0, %v2135_v35, 0.0 }
 0x7a1   :  { %1481 = vadd.xlane.f32.xlu1 %v1480_v34 }
 0x7a5   :  { %1579 = vadd.xlane.f32.xlu1 %v1578_v36 }
 0x826   :  { %v1312_v37 = vpop.xlane.xlu1 %1311 }
 0x827   :  { %2136 = vrcp.f32 %v1312_v37 }
 0x82a   :  { %v1288_v38 = vpop.xlane.xlu1 %1287 }
 0x82b   :  { %2138 = vrcp.f32 %v1288_v38 }
 0x82e   :  { %v1482_v48 = vpop.xlane.xlu1 %1481 }
 0x82f   :  { %2140 = vrcp.f32 %v1482_v48 }
 0x831   :  { %v2137_v41 = vpop.eup %2136 }
 0x832   :  { %v1314_v46 = vmul.f32 %v2137_v41, %v2129_v4  ;;  %v1580_v51 = vpop.xlane.xlu1 %1579 }
 0x833   :  { %2142 = vrcp.f32 %v1580_v51 }
 0x834   :  { %1873 = vmatmul.mubr.msk.f32.vlgmr.msra.gmra.mrb[8].mxu1 %vm36_vm0, %v1314_v46 }
 0x835   :  { %1876 = vmatpush3.msra.mxu1 %v2891_v44  ;;  %1877 = vmatprep.mubr.msk.f32.mxu1 %vm2173_vm6, %v2168_v6  ;;  %v2139_v49 = vpop.eup %2138 }
 0x836   :  { %1880 = vmatprep.subr.mxu1 %v2168_v6  ;;  %v1290_v50 = vmul.f32 %v2139_v49, %v2131_v31 }
 0x839   :  { %v2141_v53 = vpop.eup %2140 }
 0x83a   :  { %v1484_v44 = vmul.f32 %v2141_v53, %v2133_v33 }
 0x83c   :  { %1878 = vmatmul.mubr.msk.f32.vlgmr.msra.gmra.mrb[8].mxu1 %vm36_vm0, %v1290_v50 }
 0x83d   :  { %1881 = vmatpush3.msra.mxu1 %v2893_v45  ;;  %1882 = vmatprep.mubr.msk.f32.mxu1 %vm2173_vm6, %v2168_v6  ;;  %v2143_v54 = vpop.eup %2142  ;;  %v1693_v45 = vld [vmem:[%s2967_s7] ss:$0 sm:$0xff] }
 0x83e   :  { %1885 = vmatprep.subr.mxu1 %v2168_v6  ;;  %v1582_v55 = vmul.f32 %v2143_v54, %v2135_v35 }
 0x844   :  { %1883 = vmatmul.mubr.msk.f32.vlgmr.msra.gmra.mrb[8].mxu1 %vm36_vm0, %v1484_v44 }
 0x845   :  { %1886 = vmatpush3.msra.mxu1 %v2895_v47  ;;  %1887 = vmatprep.mubr.msk.f32.mxu1 %vm2173_vm6, %v2168_v6 }
 0x84c   :  { %1888 = vmatmul.mubr.msk.f32.vlgmr.msra.gmra.mrb[8].mxu1 %vm36_vm0, %v1582_v55 }
 0x91f   :  { %v1652_v57 = vpop.f32.mrb[8].mxu1 }
 0x920   :  { %v1657_v58 = vmul.f32 0.25, %v1652_v57  ;;  %v1889_v63 = vpop.f32.mrb[9].mxu1 }
 0x922   :  { %v1665_v0 = vadd.f32 %v1693_v45, %v1657_v58 }
 0x924   :  { %1666 = vst [vmem:[#allocation2] sm:$0xff] %v1665_v0 }
 0x925   :  { %2155 = shalt.err (!%p2152_p4)
}
 0x926   :  { %s2156_s19 = scalar_lea.hbm %s2968_s8, 128 }
 0x927   :  { %p2157_p5 = scmp.ne.s32.totalorder %s2968_s8, %s2156_s19  ;;  %p2160_p6 = scmp.lt.u32.totalorder %s2156_s19, %s2968_s8 }
 0x929   :  { %p2162_p7 = pnand %p2160_p6, %p2157_p5 }
 0x92b   :  { %2165 = shalt.err (!%p2162_p7)
}
 0x92c   :  { %1676 = dma.vmem_to_hbm [thread:$0]  %s1674_s15, 128, %s2968_s8, [#allocation3]  }
 0x92d   :  { %2166 = dma.done.wait [#allocation3], 128  }
 0x92e   :  { %2167 = vsyncadd [#allocation3], 4294967168 }
 0x92f   :  { %1680 = vsyncpa [#allocation3], 1 }

</bundles_post_ra>
